<compile_context>
chip_gen: v6e
topology: v6e:2x2x1
jax: 0.10.0
libtpu: 0.0.40
codegen_flags: <defaults>
</compile_context>

<pallas_src>
import functools

import jax
import jax.numpy as jnp
import numpy as np
from jax.experimental import pallas as pl
from jax.experimental.pallas import tpu as pltpu

# The PyTorch source uses a module-level constant FS (sampling frequency).
# It is not defined in the snippet; we fix it deterministically here.
FS = 100                                   # Hz
FEEDBACK_DELAY = int(50 * FS / 1000)       # = 5 steps


def afrnn_kernel(x_ref, w_in_ref, b_all_ref, b_ofb_ref, w_comb_ref,
                 w_out_ref, b_out_ref, alpha_ref,
                 out_ref, rnn_ref,
                 hh_scratch, h_ring, *, t_blk, delay, hidden_size):
    t = pl.program_id(0)
    B = x_ref.shape[1]

    # init hidden / delayed-hidden ring (== init_hidden / init_feedback: zeros)
    @pl.when(t == 0)
    def _():
        hh_scratch[...] = jnp.zeros_like(hh_scratch)
        h_ring[...] = jnp.zeros_like(h_ring)

    base = t * t_blk

    # ---- block prologue: everything with no recurrence dependence ----
    # Input projection for the whole time block in one matmul + pre-summed biases.
    x_blk = x_ref[...]                                            # (t_blk, B, in)
    xin = (jnp.dot(x_blk.reshape(t_blk * B, x_blk.shape[-1]), w_in_ref[...],
                   preferred_element_type=jnp.float32)
           + b_all_ref[...]).reshape(t_blk, B, hidden_size)       # (t_blk, B, hid)
    # The composed feedback bias (b_out @ W_fb) only applies once the delay has
    # elapsed (before that the PyTorch code feeds literal zeros into f2h).
    step_ids = base + jax.lax.broadcasted_iota(jnp.int32, (t_blk, 1, 1), 0)
    fb_mask = (step_ids >= delay).astype(jnp.float32)             # (t_blk, 1, 1)
    xin = xin + fb_mask * b_ofb_ref[...]                          # bcast (1, hid)

    # Hoisted broadcasts / weight loads (JAX does not CSE broadcast_in_dim).
    alpha_b = jnp.broadcast_to(alpha_ref[...], (B, hidden_size))
    w_comb = w_comb_ref[...]                                      # (2*hid, hid)

    # Persisted hidden carry lives in lanes [0, hidden) of hh_scratch;
    # lanes [hidden, 2*hidden) hold the delayed hidden state for the fused matmul.
    h = hh_scratch[:, pl.ds(0, hidden_size)]                      # (B, hidden)

    # ---- serial recurrence, fully unrolled over the time block ----
    # ONE fused MXU issue per step: [h_{t-1} | h_{t-delay}] @ [W_hh ; W_out@W_fb]
    for i in range(t_blk):
        slot = (base + i) % delay
        hh_scratch[:, pl.ds(hidden_size, hidden_size)] = h_ring[slot]
        pre = xin[i] + jnp.dot(hh_scratch[...], w_comb,
                               preferred_element_type=jnp.float32)
        h_new = jnp.tanh(pre)
        h = alpha_b * (h_new - h) + h                             # alpha blend (f32)
        hh_scratch[:, pl.ds(0, hidden_size)] = h                  # carry
        h_ring[slot] = h                                          # consumed at t+delay
        rnn_ref[i] = h.astype(rnn_ref.dtype)

    # ---- block epilogue: batched output projection, off the serial path ----
    rnn_blk = rnn_ref[...].astype(jnp.float32).reshape(t_blk * B, hidden_size)
    out_blk = (jnp.dot(rnn_blk, w_out_ref[...],
                       preferred_element_type=jnp.float32) + b_out_ref[...])
    out_ref[...] = out_blk.reshape(t_blk, B, out_ref.shape[-1]).astype(out_ref.dtype)


def afrnn_forward(x, params, *, delay=FEEDBACK_DELAY, t_blk=64):
    """x: (T, B, input_size). Returns (out, rnn_output) matching AFRNN.forward."""
    if delay < 1:
        raise ValueError("feedback_delay must be >= 1 (delay=0 is invalid in the "
                         "PyTorch module as well)")
    T, B, input_size = x.shape
    w_in, b_in, w_hh, b_hh, w_fb, b_fb, w_out, b_out, alpha = params
    hidden_size = w_in.shape[1]
    output_size = w_out.shape[1]

    # Fuse the serial-path weights / biases ONCE, outside the kernel:
    #   feedback contribution  out[t-d] @ W_fb == h[t-d] @ (W_out @ W_fb) + b_out @ W_fb
    #   serial matmul          [h_{t-1} | h_{t-d}] @ [W_hh ; W_out @ W_fb]
    w_of = jnp.dot(w_out.astype(jnp.float32), w_fb.astype(jnp.float32))   # (hid, hid)
    w_comb = jnp.concatenate([w_hh.astype(jnp.float32), w_of], axis=0)    # (2*hid, hid)
    b_all = (b_in + b_hh + b_fb).astype(jnp.float32)                      # (1, hid)
    b_ofb = jnp.dot(b_out.astype(jnp.float32), w_fb.astype(jnp.float32))  # (1, hid)

    # Time blocking: pad T to a multiple of t_blk (extra steps read zero input and
    # are sliced away; the recurrence is forward-only so they affect nothing valid).
    t_blk = int(max(1, min(t_blk, T)))
    num_blocks = -(-T // t_blk)
    T_pad = num_blocks * t_blk
    x_p = jnp.pad(x, ((0, T_pad - T), (0, 0), (0, 0))) if T_pad != T else x

    full = lambda shape: pl.BlockSpec(shape, lambda t: (0,) * len(shape))

    kernel = functools.partial(afrnn_kernel, t_blk=t_blk, delay=delay,
                               hidden_size=hidden_size)

    out, rnn_out = pl.pallas_call(
        kernel,
        out_shape=(
            jax.ShapeDtypeStruct((T_pad, B, output_size), jnp.float32),
            jax.ShapeDtypeStruct((T_pad, B, hidden_size), jnp.float32),
        ),
        grid_spec=pltpu.PrefetchScalarGridSpec(
            num_scalar_prefetch=0,
            grid=(num_blocks,),
            in_specs=[
                pl.BlockSpec((t_blk, B, input_size), lambda t: (t, 0, 0)),  # x block
                full(w_in.shape), full(b_all.shape), full(b_ofb.shape),
                full(w_comb.shape), full(w_out.shape), full(b_out.shape),
                full(alpha.shape),
            ],
            out_specs=[
                pl.BlockSpec((t_blk, B, output_size), lambda t: (t, 0, 0)),
                pl.BlockSpec((t_blk, B, hidden_size), lambda t: (t, 0, 0)),
            ],
            scratch_shapes=[
                pltpu.VMEM((B, 2 * hidden_size), jnp.float32),    # [h | h_delayed]
                pltpu.VMEM((delay, B, hidden_size), jnp.float32), # hidden ring
            ],
        ),
        compiler_params=pltpu.CompilerParams(
            dimension_semantics=("arbitrary",),  # sequential recurrence over time
        ),
    )(x_p, w_in, b_all, b_ofb, w_comb, w_out, b_out, alpha)

    if T_pad != T:
        out = out[:T]
        rnn_out = rnn_out[:T]
    return out, rnn_out


def make_params(key, input_size, hidden_size, output_size, alpha_values):
    ks = jax.random.split(key, 9)
    scale = 0.3
    # weights stored as (in, out) == torch weight.T
    w_in = jax.random.normal(ks[0], (input_size, hidden_size), jnp.float32) * scale
    b_in = jax.random.normal(ks[1], (1, hidden_size), jnp.float32) * scale
    w_hh = jax.random.normal(ks[2], (hidden_size, hidden_size), jnp.float32) * scale
    b_hh = jax.random.normal(ks[3], (1, hidden_size), jnp.float32) * scale
    w_fb = jax.random.normal(ks[4], (output_size, hidden_size), jnp.float32) * scale
    b_fb = jax.random.normal(ks[5], (1, hidden_size), jnp.float32) * scale
    w_out = jax.random.normal(ks[6], (hidden_size, output_size), jnp.float32) * scale
    b_out = jax.random.normal(ks[7], (1, output_size), jnp.float32) * scale

    # alpha parameter construction, mirroring AFRNN.__init__:
    # random indices into unique(alpha_values), mapped to those values, shape (1, hidden)
    unique_alphas = np.unique(np.asarray(alpha_values))
    if len(unique_alphas) != 0:
        idx = jax.random.randint(ks[8], (1, hidden_size), 0, len(unique_alphas))
        alpha = jnp.asarray(unique_alphas, jnp.float32)[idx]
    else:
        alpha = jnp.zeros((1, hidden_size), jnp.float32)
    return (w_in, b_in, w_hh, b_hh, w_fb, b_fb, w_out, b_out, alpha)


def afrnn_reference(x, params, *, delay=FEEDBACK_DELAY):
    """Pure-JAX reference mirroring the PyTorch forward loop (un-fused layers)."""
    w_in, b_in, w_hh, b_hh, w_fb, b_fb, w_out, b_out, alpha = params
    T, B, _ = x.shape
    hidden = jnp.zeros((B, w_in.shape[1]), jnp.float32)
    feedback0 = jnp.zeros((B, w_out.shape[1]), jnp.float32)
    outs, rnn = [], []
    for i in range(T):
        fb = feedback0 if i < delay else outs[i - delay]
        h_new = jnp.tanh(x[i] @ w_in + b_in + hidden @ w_hh + b_hh + fb @ w_fb + b_fb)
        hidden = alpha * (h_new - hidden) + hidden
        rnn.append(hidden)
        outs.append(hidden @ w_out + b_out)
    return jnp.stack(outs, 0), jnp.stack(rnn, 0)


if __name__ == "__main__":
    T, B = 8, 2
    input_size, hidden_size, output_size = 4, 32, 8
    alpha_values = [0.2, 0.5, 0.8]

    key = jax.random.PRNGKey(0)
    kx, kp = jax.random.split(key)
    x = jax.random.normal(kx, (T, B, input_size), jnp.float32)
    params = make_params(kp, input_size, hidden_size, output_size, alpha_values)

    ref_out, ref_rnn = afrnn_reference(x, params)

    # Default path: t_blk clamps to T -> single grid step, fully unrolled block.
    out, rnn_out = afrnn_forward(x, params)
    out, rnn_out = jax.block_until_ready((out, rnn_out))
    np.testing.assert_allclose(np.asarray(out), np.asarray(ref_out), rtol=1e-4, atol=1e-5)
    np.testing.assert_allclose(np.asarray(rnn_out), np.asarray(ref_rnn), rtol=1e-4, atol=1e-5)

    # Multi-block + padded-tail path: exercises cross-block hidden / delayed-hidden
    # ring carry in VMEM scratch and the T-padding/slicing logic.
    out2, rnn_out2 = afrnn_forward(x, params, t_blk=3)
    out2, rnn_out2 = jax.block_until_ready((out2, rnn_out2))
    np.testing.assert_allclose(np.asarray(out2), np.asarray(ref_out), rtol=1e-4, atol=1e-5)
    np.testing.assert_allclose(np.asarray(rnn_out2), np.asarray(ref_rnn), rtol=1e-4, atol=1e-5)

    assert out.shape == (T, B, output_size) and rnn_out.shape == (T, B, hidden_size)
    print("KERNEL_OK")
</pallas_src>

<mosaic_0001>
module attributes {stable_mosaic.version = 11 : i64} {
  func.func @afrnn_kernel(%arg0: i32, %arg1: memref<8x2x4xf32, #tpu.memory_space<vmem>>, %arg2: memref<4x32xf32, #tpu.memory_space<vmem>>, %arg3: memref<1x32xf32, #tpu.memory_space<vmem>>, %arg4: memref<1x32xf32, #tpu.memory_space<vmem>>, %arg5: memref<64x32xf32, #tpu.memory_space<vmem>>, %arg6: memref<32x8xf32, #tpu.memory_space<vmem>>, %arg7: memref<1x8xf32, #tpu.memory_space<vmem>>, %arg8: memref<1x32xf32, #tpu.memory_space<vmem>>, %arg9: memref<8x2x8xf32, #tpu.memory_space<vmem>>, %arg10: memref<8x2x32xf32, #tpu.memory_space<vmem>>, %arg11: memref<2x64xf32, #tpu.memory_space<vmem>>, %arg12: memref<5x2x32xf32, #tpu.memory_space<vmem>>) attributes {dimension_semantics = [#tpu.dimension_semantics<arbitrary>], iteration_bounds = array<i64: 1>, scalar_prefetch = 0 : i64, scratch_operands = 2 : i64, tpu.core_type = #tpu.core_type<tc>, window_params = [{transform_indices = @transform_0, window_bounds = array<i64: 8, 2, 4>}, {pipeline_mode = #tpu.pipeline_mode<synchronous>, transform_indices = @transform_1, window_bounds = array<i64: 4, 32>}, {pipeline_mode = #tpu.pipeline_mode<synchronous>, transform_indices = @transform_2, window_bounds = array<i64: 1, 32>}, {pipeline_mode = #tpu.pipeline_mode<synchronous>, transform_indices = @transform_3, window_bounds = array<i64: 1, 32>}, {pipeline_mode = #tpu.pipeline_mode<synchronous>, transform_indices = @transform_4, window_bounds = array<i64: 64, 32>}, {pipeline_mode = #tpu.pipeline_mode<synchronous>, transform_indices = @transform_5, window_bounds = array<i64: 32, 8>}, {pipeline_mode = #tpu.pipeline_mode<synchronous>, transform_indices = @transform_6, window_bounds = array<i64: 1, 8>}, {pipeline_mode = #tpu.pipeline_mode<synchronous>, transform_indices = @transform_7, window_bounds = array<i64: 1, 32>}, {transform_indices = @transform_8, window_bounds = array<i64: 8, 2, 8>}, {transform_indices = @transform_9, window_bounds = array<i64: 8, 2, 32>}]} {
    %c0_i32 = arith.constant 0 : i32
    %0 = arith.cmpi eq, %arg0, %c0_i32 : i32
    %1 = arith.extui %0 : i1 to i32
    %c0_i32_0 = arith.constant 0 : i32
    %2 = arith.cmpi ne, %1, %c0_i32_0 : i32
    scf.if %2 {
      %cst_180 = arith.constant 0.000000e+00 : f32
      %296 = vector.broadcast %cst_180 : f32 to vector<2x64xf32>
      %c0_181 = arith.constant 0 : index
      %c0_182 = arith.constant 0 : index
      %297 = vector.load %arg11[%c0_181, %c0_182] : memref<2x64xf32, #tpu.memory_space<vmem>>, vector<2x64xf32>
      tpu.vector_store %arg11[%c0_181, %c0_182], %296 {strides = array<i32>} : memref<2x64xf32, #tpu.memory_space<vmem>>, vector<2x64xf32>,
      %cst_183 = arith.constant 0.000000e+00 : f32
      %298 = vector.broadcast %cst_183 : f32 to vector<5x2x32xf32>
      %c0_184 = arith.constant 0 : index
      %c0_185 = arith.constant 0 : index
      %c0_186 = arith.constant 0 : index
      %299 = vector.load %arg12[%c0_184, %c0_185, %c0_186] : memref<5x2x32xf32, #tpu.memory_space<vmem>>, vector<5x2x32xf32>
      tpu.vector_store %arg12[%c0_184, %c0_185, %c0_186], %298 {strides = array<i32>} : memref<5x2x32xf32, #tpu.memory_space<vmem>>, vector<5x2x32xf32>,
    } else {
    }
    %c8_i32 = arith.constant 8 : i32
    %3 = arith.muli %arg0, %c8_i32 : i32
    %c0 = arith.constant 0 : index
    %c0_1 = arith.constant 0 : index
    %c0_2 = arith.constant 0 : index
    %4 = vector.load %arg1[%c0, %c0_1, %c0_2] : memref<8x2x4xf32, #tpu.memory_space<vmem>>, vector<8x2x4xf32>
    %5 = vector.shape_cast %4 : vector<8x2x4xf32> to vector<16x4xf32>
    %c0_3 = arith.constant 0 : index
    %c0_4 = arith.constant 0 : index
    %6 = vector.load %arg2[%c0_3, %c0_4] : memref<4x32xf32, #tpu.memory_space<vmem>>, vector<4x32xf32>
    %cst = arith.constant dense<0.000000e+00> : vector<16x32xf32>
    %7 = tpu.matmul %5, %6, %cst {dimension_numbers = #tpu.dot_dimension_numbers<[1], [0], [0], [1], [0, 0, 1, 1], [], []>} : vector<16x4xf32>, vector<4x32xf32>, vector<16x32xf32> -> vector<16x32xf32>
    %c0_5 = arith.constant 0 : index
    %c0_6 = arith.constant 0 : index
    %8 = vector.load %arg3[%c0_5, %c0_6] : memref<1x32xf32, #tpu.memory_space<vmem>>, vector<1x32xf32>
    %9 = vector.broadcast %8 : vector<1x32xf32> to vector<16x32xf32>
    %10 = arith.addf %7, %9 : vector<16x32xf32>
    %11 = vector.shape_cast %10 : vector<16x32xf32> to vector<8x2x32xf32>
    %12 = tpu.iota {dimensions = array<i32: 0>} : vector<8x1x1xi32>
    %13 = vector.broadcast %3 : i32 to vector<8x1x1xi32>
    %14 = arith.addi %13, %12 : vector<8x1x1xi32>
    %c5_i32 = arith.constant 5 : i32
    %15 = vector.broadcast %c5_i32 : i32 to vector<8x1x1xi32>
    %16 = arith.cmpi sge, %14, %15 : vector<8x1x1xi32>
    %17 = arith.extui %16 : vector<8x1x1xi1> to vector<8x1x1xi32>
    %18 = arith.sitofp %17 : vector<8x1x1xi32> to vector<8x1x1xf32>
    %c0_7 = arith.constant 0 : index
    %c0_8 = arith.constant 0 : index
    %19 = vector.load %arg4[%c0_7, %c0_8] : memref<1x32xf32, #tpu.memory_space<vmem>>, vector<1x32xf32>
    %20 = vector.shape_cast %19 : vector<1x32xf32> to vector<1x1x32xf32>
    %21 = vector.broadcast %18 : vector<8x1x1xf32> to vector<8x1x32xf32>
    %22 = vector.broadcast %20 : vector<1x1x32xf32> to vector<8x1x32xf32>
    %23 = arith.mulf %21, %22 : vector<8x1x32xf32>
    %24 = vector.broadcast %23 : vector<8x1x32xf32> to vector<8x2x32xf32>
    %25 = arith.addf %11, %24 : vector<8x2x32xf32>
    %c0_9 = arith.constant 0 : index
    %c0_10 = arith.constant 0 : index
    %26 = vector.load %arg8[%c0_9, %c0_10] : memref<1x32xf32, #tpu.memory_space<vmem>>, vector<1x32xf32>
    %27 = vector.shape_cast %26 : vector<1x32xf32> to vector<1x32xf32>
    %28 = vector.broadcast %27 : vector<1x32xf32> to vector<2x32xf32>
    %c0_11 = arith.constant 0 : index
    %c0_12 = arith.constant 0 : index
    %29 = vector.load %arg5[%c0_11, %c0_12] : memref<64x32xf32, #tpu.memory_space<vmem>>, vector<64x32xf32>
    %c0_13 = arith.constant 0 : index
    %c0_14 = arith.constant 0 : index
    %30 = vector.load %arg11[%c0_13, %c0_14] : memref<2x64xf32, #tpu.memory_space<vmem>>, vector<2x32xf32>
    %c0_i32_15 = arith.constant 0 : i32
    %31 = arith.addi %3, %c0_i32_15 : i32
    %c5_i32_16 = arith.constant 5 : i32
    %c0_i32_17 = arith.constant 0 : i32
    %32 = arith.cmpi eq, %c5_i32_16, %c0_i32_17 : i32
    %c1_i32 = arith.constant 1 : i32
    %33 = arith.select %32, %c1_i32, %c5_i32_16 : i32
    %34 = arith.remsi %31, %33 : i32
    %c0_i32_18 = arith.constant 0 : i32
    %35 = arith.cmpi ne, %34, %c0_i32_18 : i32
    %c0_i32_19 = arith.constant 0 : i32
    %36 = arith.cmpi slt, %34, %c0_i32_19 : i32
    %c0_i32_20 = arith.constant 0 : i32
    %37 = arith.cmpi slt, %33, %c0_i32_20 : i32
    %38 = arith.xori %36, %37 : i1
    %39 = arith.andi %38, %35 : i1
    %40 = arith.addi %34, %33 : i32
    %41 = arith.select %39, %40, %34 : i32
    %42 = arith.index_cast %41 : i32 to index
    %c0_21 = arith.constant 0 : index
    %c0_22 = arith.constant 0 : index
    %43 = vector.load %arg12[%42, %c0_21, %c0_22] : memref<5x2x32xf32, #tpu.memory_space<vmem>>, vector<1x2x32xf32>
    %44 = vector.shape_cast %43 : vector<1x2x32xf32> to vector<2x32xf32>
    %c0_23 = arith.constant 0 : index
    %c32 = arith.constant 32 : index
    %45 = vector.load %arg11[%c0_23, %c32] : memref<2x64xf32, #tpu.memory_space<vmem>>, vector<2x32xf32>
    tpu.vector_store %arg11[%c0_23, %c32], %44 {strides = array<i32>} : memref<2x64xf32, #tpu.memory_space<vmem>>, vector<2x32xf32>,
    %46 = vector.extract_strided_slice %25 {offsets = [0, 0, 0], sizes = [1, 2, 32], strides = [1, 1, 1]} : vector<8x2x32xf32> to vector<1x2x32xf32>
    %47 = vector.shape_cast %46 : vector<1x2x32xf32> to vector<2x32xf32>
    %c0_24 = arith.constant 0 : index
    %c0_25 = arith.constant 0 : index
    %48 = vector.load %arg11[%c0_24, %c0_25] : memref<2x64xf32, #tpu.memory_space<vmem>>, vector<2x64xf32>
    %cst_26 = arith.constant dense<0.000000e+00> : vector<2x32xf32>
    %49 = tpu.matmul %48, %29, %cst_26 {dimension_numbers = #tpu.dot_dimension_numbers<[1], [0], [0], [1], [0, 0, 1, 1], [], []>} : vector<2x64xf32>, vector<64x32xf32>, vector<2x32xf32> -> vector<2x32xf32>
    %50 = arith.addf %47, %49 : vector<2x32xf32>
    %51 = math.tanh %50 : vector<2x32xf32>
    %52 = arith.subf %51, %30 : vector<2x32xf32>
    %53 = arith.mulf %28, %52 : vector<2x32xf32>
    %54 = arith.addf %53, %30 : vector<2x32xf32>
    %c0_27 = arith.constant 0 : index
    %c0_28 = arith.constant 0 : index
    %55 = vector.load %arg11[%c0_27, %c0_28] : memref<2x64xf32, #tpu.memory_space<vmem>>, vector<2x32xf32>
    tpu.vector_store %arg11[%c0_27, %c0_28], %54 {strides = array<i32>} : memref<2x64xf32, #tpu.memory_space<vmem>>, vector<2x32xf32>,
    %56 = arith.index_cast %41 : i32 to index
    %c0_29 = arith.constant 0 : index
    %c0_30 = arith.constant 0 : index
    %57 = vector.load %arg12[%56, %c0_29, %c0_30] : memref<5x2x32xf32, #tpu.memory_space<vmem>>, vector<1x2x32xf32>
    %58 = vector.shape_cast %57 : vector<1x2x32xf32> to vector<2x32xf32>
    %59 = vector.shape_cast %54 : vector<2x32xf32> to vector<1x2x32xf32>
    tpu.vector_store %arg12[%56, %c0_29, %c0_30], %59 {strides = array<i32>} : memref<5x2x32xf32, #tpu.memory_space<vmem>>, vector<1x2x32xf32>,
    %c0_31 = arith.constant 0 : index
    %c0_32 = arith.constant 0 : index
    %c0_33 = arith.constant 0 : index
    %60 = vector.load %arg10[%c0_31, %c0_32, %c0_33] : memref<8x2x32xf32, #tpu.memory_space<vmem>>, vector<1x2x32xf32>
    %61 = vector.shape_cast %60 : vector<1x2x32xf32> to vector<2x32xf32>
    %62 = vector.shape_cast %54 : vector<2x32xf32> to vector<1x2x32xf32>
    tpu.vector_store %arg10[%c0_31, %c0_32, %c0_33], %62 {strides = array<i32>} : memref<8x2x32xf32, #tpu.memory_space<vmem>>, vector<1x2x32xf32>,
    %c1_i32_34 = arith.constant 1 : i32
    %63 = arith.addi %3, %c1_i32_34 : i32
    %c5_i32_35 = arith.constant 5 : i32
    %c0_i32_36 = arith.constant 0 : i32
    %64 = arith.cmpi eq, %c5_i32_35, %c0_i32_36 : i32
    %c1_i32_37 = arith.constant 1 : i32
    %65 = arith.select %64, %c1_i32_37, %c5_i32_35 : i32
    %66 = arith.remsi %63, %65 : i32
    %c0_i32_38 = arith.constant 0 : i32
    %67 = arith.cmpi ne, %66, %c0_i32_38 : i32
    %c0_i32_39 = arith.constant 0 : i32
    %68 = arith.cmpi slt, %66, %c0_i32_39 : i32
    %c0_i32_40 = arith.constant 0 : i32
    %69 = arith.cmpi slt, %65, %c0_i32_40 : i32
    %70 = arith.xori %68, %69 : i1
    %71 = arith.andi %70, %67 : i1
    %72 = arith.addi %66, %65 : i32
    %73 = arith.select %71, %72, %66 : i32
    %74 = arith.index_cast %73 : i32 to index
    %c0_41 = arith.constant 0 : index
    %c0_42 = arith.constant 0 : index
    %75 = vector.load %arg12[%74, %c0_41, %c0_42] : memref<5x2x32xf32, #tpu.memory_space<vmem>>, vector<1x2x32xf32>
    %76 = vector.shape_cast %75 : vector<1x2x32xf32> to vector<2x32xf32>
    %c0_43 = arith.constant 0 : index
    %c32_44 = arith.constant 32 : index
    %77 = vector.load %arg11[%c0_43, %c32_44] : memref<2x64xf32, #tpu.memory_space<vmem>>, vector<2x32xf32>
    tpu.vector_store %arg11[%c0_43, %c32_44], %76 {strides = array<i32>} : memref<2x64xf32, #tpu.memory_space<vmem>>, vector<2x32xf32>,
    %78 = vector.extract_strided_slice %25 {offsets = [1, 0, 0], sizes = [1, 2, 32], strides = [1, 1, 1]} : vector<8x2x32xf32> to vector<1x2x32xf32>
    %79 = vector.shape_cast %78 : vector<1x2x32xf32> to vector<2x32xf32>
    %c0_45 = arith.constant 0 : index
    %c0_46 = arith.constant 0 : index
    %80 = vector.load %arg11[%c0_45, %c0_46] : memref<2x64xf32, #tpu.memory_space<vmem>>, vector<2x64xf32>
    %cst_47 = arith.constant dense<0.000000e+00> : vector<2x32xf32>
    %81 = tpu.matmul %80, %29, %cst_47 {dimension_numbers = #tpu.dot_dimension_numbers<[1], [0], [0], [1], [0, 0, 1, 1], [], []>} : vector<2x64xf32>, vector<64x32xf32>, vector<2x32xf32> -> vector<2x32xf32>
    %82 = arith.addf %79, %81 : vector<2x32xf32>
    %83 = math.tanh %82 : vector<2x32xf32>
    %84 = arith.subf %83, %54 : vector<2x32xf32>
    %85 = arith.mulf %28, %84 : vector<2x32xf32>
    %86 = arith.addf %85, %54 : vector<2x32xf32>
    %c0_48 = arith.constant 0 : index
    %c0_49 = arith.constant 0 : index
    %87 = vector.load %arg11[%c0_48, %c0_49] : memref<2x64xf32, #tpu.memory_space<vmem>>, vector<2x32xf32>
    tpu.vector_store %arg11[%c0_48, %c0_49], %86 {strides = array<i32>} : memref<2x64xf32, #tpu.memory_space<vmem>>, vector<2x32xf32>,
    %88 = arith.index_cast %73 : i32 to index
    %c0_50 = arith.constant 0 : index
    %c0_51 = arith.constant 0 : index
    %89 = vector.load %arg12[%88, %c0_50, %c0_51] : memref<5x2x32xf32, #tpu.memory_space<vmem>>, vector<1x2x32xf32>
    %90 = vector.shape_cast %89 : vector<1x2x32xf32> to vector<2x32xf32>
    %91 = vector.shape_cast %86 : vector<2x32xf32> to vector<1x2x32xf32>
    tpu.vector_store %arg12[%88, %c0_50, %c0_51], %91 {strides = array<i32>} : memref<5x2x32xf32, #tpu.memory_space<vmem>>, vector<1x2x32xf32>,
    %c1 = arith.constant 1 : index
    %c0_52 = arith.constant 0 : index
    %c0_53 = arith.constant 0 : index
    %92 = vector.load %arg10[%c1, %c0_52, %c0_53] : memref<8x2x32xf32, #tpu.memory_space<vmem>>, vector<1x2x32xf32>
    %93 = vector.shape_cast %92 : vector<1x2x32xf32> to vector<2x32xf32>
    %94 = vector.shape_cast %86 : vector<2x32xf32> to vector<1x2x32xf32>
    tpu.vector_store %arg10[%c1, %c0_52, %c0_53], %94 {strides = array<i32>} : memref<8x2x32xf32, #tpu.memory_space<vmem>>, vector<1x2x32xf32>,
    %c2_i32 = arith.constant 2 : i32
    %95 = arith.addi %3, %c2_i32 : i32
    %c5_i32_54 = arith.constant 5 : i32
    %c0_i32_55 = arith.constant 0 : i32
    %96 = arith.cmpi eq, %c5_i32_54, %c0_i32_55 : i32
    %c1_i32_56 = arith.constant 1 : i32
    %97 = arith.select %96, %c1_i32_56, %c5_i32_54 : i32
    %98 = arith.remsi %95, %97 : i32
    %c0_i32_57 = arith.constant 0 : i32
    %99 = arith.cmpi ne, %98, %c0_i32_57 : i32
    %c0_i32_58 = arith.constant 0 : i32
    %100 = arith.cmpi slt, %98, %c0_i32_58 : i32
    %c0_i32_59 = arith.constant 0 : i32
    %101 = arith.cmpi slt, %97, %c0_i32_59 : i32
    %102 = arith.xori %100, %101 : i1
    %103 = arith.andi %102, %99 : i1
    %104 = arith.addi %98, %97 : i32
    %105 = arith.select %103, %104, %98 : i32
    %106 = arith.index_cast %105 : i32 to index
    %c0_60 = arith.constant 0 : index
    %c0_61 = arith.constant 0 : index
    %107 = vector.load %arg12[%106, %c0_60, %c0_61] : memref<5x2x32xf32, #tpu.memory_space<vmem>>, vector<1x2x32xf32>
    %108 = vector.shape_cast %107 : vector<1x2x32xf32> to vector<2x32xf32>
    %c0_62 = arith.constant 0 : index
    %c32_63 = arith.constant 32 : index
    %109 = vector.load %arg11[%c0_62, %c32_63] : memref<2x64xf32, #tpu.memory_space<vmem>>, vector<2x32xf32>
    tpu.vector_store %arg11[%c0_62, %c32_63], %108 {strides = array<i32>} : memref<2x64xf32, #tpu.memory_space<vmem>>, vector<2x32xf32>,
    %110 = vector.extract_strided_slice %25 {offsets = [2, 0, 0], sizes = [1, 2, 32], strides = [1, 1, 1]} : vector<8x2x32xf32> to vector<1x2x32xf32>
    %111 = vector.shape_cast %110 : vector<1x2x32xf32> to vector<2x32xf32>
    %c0_64 = arith.constant 0 : index
    %c0_65 = arith.constant 0 : index
    %112 = vector.load %arg11[%c0_64, %c0_65] : memref<2x64xf32, #tpu.memory_space<vmem>>, vector<2x64xf32>
    %cst_66 = arith.constant dense<0.000000e+00> : vector<2x32xf32>
    %113 = tpu.matmul %112, %29, %cst_66 {dimension_numbers = #tpu.dot_dimension_numbers<[1], [0], [0], [1], [0, 0, 1, 1], [], []>} : vector<2x64xf32>, vector<64x32xf32>, vector<2x32xf32> -> vector<2x32xf32>
    %114 = arith.addf %111, %113 : vector<2x32xf32>
    %115 = math.tanh %114 : vector<2x32xf32>
    %116 = arith.subf %115, %86 : vector<2x32xf32>
    %117 = arith.mulf %28, %116 : vector<2x32xf32>
    %118 = arith.addf %117, %86 : vector<2x32xf32>
    %c0_67 = arith.constant 0 : index
    %c0_68 = arith.constant 0 : index
    %119 = vector.load %arg11[%c0_67, %c0_68] : memref<2x64xf32, #tpu.memory_space<vmem>>, vector<2x32xf32>
    tpu.vector_store %arg11[%c0_67, %c0_68], %118 {strides = array<i32>} : memref<2x64xf32, #tpu.memory_space<vmem>>, vector<2x32xf32>,
    %120 = arith.index_cast %105 : i32 to index
    %c0_69 = arith.constant 0 : index
    %c0_70 = arith.constant 0 : index
    %121 = vector.load %arg12[%120, %c0_69, %c0_70] : memref<5x2x32xf32, #tpu.memory_space<vmem>>, vector<1x2x32xf32>
    %122 = vector.shape_cast %121 : vector<1x2x32xf32> to vector<2x32xf32>
    %123 = vector.shape_cast %118 : vector<2x32xf32> to vector<1x2x32xf32>
    tpu.vector_store %arg12[%120, %c0_69, %c0_70], %123 {strides = array<i32>} : memref<5x2x32xf32, #tpu.memory_space<vmem>>, vector<1x2x32xf32>,
    %c2 = arith.constant 2 : index
    %c0_71 = arith.constant 0 : index
    %c0_72 = arith.constant 0 : index
    %124 = vector.load %arg10[%c2, %c0_71, %c0_72] : memref<8x2x32xf32, #tpu.memory_space<vmem>>, vector<1x2x32xf32>
    %125 = vector.shape_cast %124 : vector<1x2x32xf32> to vector<2x32xf32>
    %126 = vector.shape_cast %118 : vector<2x32xf32> to vector<1x2x32xf32>
    tpu.vector_store %arg10[%c2, %c0_71, %c0_72], %126 {strides = array<i32>} : memref<8x2x32xf32, #tpu.memory_space<vmem>>, vector<1x2x32xf32>,
    %c3_i32 = arith.constant 3 : i32
    %127 = arith.addi %3, %c3_i32 : i32
    %c5_i32_73 = arith.constant 5 : i32
    %c0_i32_74 = arith.constant 0 : i32
    %128 = arith.cmpi eq, %c5_i32_73, %c0_i32_74 : i32
    %c1_i32_75 = arith.constant 1 : i32
    %129 = arith.select %128, %c1_i32_75, %c5_i32_73 : i32
    %130 = arith.remsi %127, %129 : i32
    %c0_i32_76 = arith.constant 0 : i32
    %131 = arith.cmpi ne, %130, %c0_i32_76 : i32
    %c0_i32_77 = arith.constant 0 : i32
    %132 = arith.cmpi slt, %130, %c0_i32_77 : i32
    %c0_i32_78 = arith.constant 0 : i32
    %133 = arith.cmpi slt, %129, %c0_i32_78 : i32
    %134 = arith.xori %132, %133 : i1
    %135 = arith.andi %134, %131 : i1
    %136 = arith.addi %130, %129 : i32
    %137 = arith.select %135, %136, %130 : i32
    %138 = arith.index_cast %137 : i32 to index
    %c0_79 = arith.constant 0 : index
    %c0_80 = arith.constant 0 : index
    %139 = vector.load %arg12[%138, %c0_79, %c0_80] : memref<5x2x32xf32, #tpu.memory_space<vmem>>, vector<1x2x32xf32>
    %140 = vector.shape_cast %139 : vector<1x2x32xf32> to vector<2x32xf32>
    %c0_81 = arith.constant 0 : index
    %c32_82 = arith.constant 32 : index
    %141 = vector.load %arg11[%c0_81, %c32_82] : memref<2x64xf32, #tpu.memory_space<vmem>>, vector<2x32xf32>
    tpu.vector_store %arg11[%c0_81, %c32_82], %140 {strides = array<i32>} : memref<2x64xf32, #tpu.memory_space<vmem>>, vector<2x32xf32>,
    %142 = vector.extract_strided_slice %25 {offsets = [3, 0, 0], sizes = [1, 2, 32], strides = [1, 1, 1]} : vector<8x2x32xf32> to vector<1x2x32xf32>
    %143 = vector.shape_cast %142 : vector<1x2x32xf32> to vector<2x32xf32>
    %c0_83 = arith.constant 0 : index
    %c0_84 = arith.constant 0 : index
    %144 = vector.load %arg11[%c0_83, %c0_84] : memref<2x64xf32, #tpu.memory_space<vmem>>, vector<2x64xf32>
    %cst_85 = arith.constant dense<0.000000e+00> : vector<2x32xf32>
    %145 = tpu.matmul %144, %29, %cst_85 {dimension_numbers = #tpu.dot_dimension_numbers<[1], [0], [0], [1], [0, 0, 1, 1], [], []>} : vector<2x64xf32>, vector<64x32xf32>, vector<2x32xf32> -> vector<2x32xf32>
    %146 = arith.addf %143, %145 : vector<2x32xf32>
    %147 = math.tanh %146 : vector<2x32xf32>
    %148 = arith.subf %147, %118 : vector<2x32xf32>
    %149 = arith.mulf %28, %148 : vector<2x32xf32>
    %150 = arith.addf %149, %118 : vector<2x32xf32>
    %c0_86 = arith.constant 0 : index
    %c0_87 = arith.constant 0 : index
    %151 = vector.load %arg11[%c0_86, %c0_87] : memref<2x64xf32, #tpu.memory_space<vmem>>, vector<2x32xf32>
    tpu.vector_store %arg11[%c0_86, %c0_87], %150 {strides = array<i32>} : memref<2x64xf32, #tpu.memory_space<vmem>>, vector<2x32xf32>,
    %152 = arith.index_cast %137 : i32 to index
    %c0_88 = arith.constant 0 : index
    %c0_89 = arith.constant 0 : index
    %153 = vector.load %arg12[%152, %c0_88, %c0_89] : memref<5x2x32xf32, #tpu.memory_space<vmem>>, vector<1x2x32xf32>
    %154 = vector.shape_cast %153 : vector<1x2x32xf32> to vector<2x32xf32>
    %155 = vector.shape_cast %150 : vector<2x32xf32> to vector<1x2x32xf32>
    tpu.vector_store %arg12[%152, %c0_88, %c0_89], %155 {strides = array<i32>} : memref<5x2x32xf32, #tpu.memory_space<vmem>>, vector<1x2x32xf32>,
    %c3 = arith.constant 3 : index
    %c0_90 = arith.constant 0 : index
    %c0_91 = arith.constant 0 : index
    %156 = vector.load %arg10[%c3, %c0_90, %c0_91] : memref<8x2x32xf32, #tpu.memory_space<vmem>>, vector<1x2x32xf32>
    %157 = vector.shape_cast %156 : vector<1x2x32xf32> to vector<2x32xf32>
    %158 = vector.shape_cast %150 : vector<2x32xf32> to vector<1x2x32xf32>
    tpu.vector_store %arg10[%c3, %c0_90, %c0_91], %158 {strides = array<i32>} : memref<8x2x32xf32, #tpu.memory_space<vmem>>, vector<1x2x32xf32>,
    %c4_i32 = arith.constant 4 : i32
    %159 = arith.addi %3, %c4_i32 : i32
    %c5_i32_92 = arith.constant 5 : i32
    %c0_i32_93 = arith.constant 0 : i32
    %160 = arith.cmpi eq, %c5_i32_92, %c0_i32_93 : i32
    %c1_i32_94 = arith.constant 1 : i32
    %161 = arith.select %160, %c1_i32_94, %c5_i32_92 : i32
    %162 = arith.remsi %159, %161 : i32
    %c0_i32_95 = arith.constant 0 : i32
    %163 = arith.cmpi ne, %162, %c0_i32_95 : i32
    %c0_i32_96 = arith.constant 0 : i32
    %164 = arith.cmpi slt, %162, %c0_i32_96 : i32
    %c0_i32_97 = arith.constant 0 : i32
    %165 = arith.cmpi slt, %161, %c0_i32_97 : i32
    %166 = arith.xori %164, %165 : i1
    %167 = arith.andi %166, %163 : i1
    %168 = arith.addi %162, %161 : i32
    %169 = arith.select %167, %168, %162 : i32
    %170 = arith.index_cast %169 : i32 to index
    %c0_98 = arith.constant 0 : index
    %c0_99 = arith.constant 0 : index
    %171 = vector.load %arg12[%170, %c0_98, %c0_99] : memref<5x2x32xf32, #tpu.memory_space<vmem>>, vector<1x2x32xf32>
    %172 = vector.shape_cast %171 : vector<1x2x32xf32> to vector<2x32xf32>
    %c0_100 = arith.constant 0 : index
    %c32_101 = arith.constant 32 : index
    %173 = vector.load %arg11[%c0_100, %c32_101] : memref<2x64xf32, #tpu.memory_space<vmem>>, vector<2x32xf32>
    tpu.vector_store %arg11[%c0_100, %c32_101], %172 {strides = array<i32>} : memref<2x64xf32, #tpu.memory_space<vmem>>, vector<2x32xf32>,
    %174 = vector.extract_strided_slice %25 {offsets = [4, 0, 0], sizes = [1, 2, 32], strides = [1, 1, 1]} : vector<8x2x32xf32> to vector<1x2x32xf32>
    %175 = vector.shape_cast %174 : vector<1x2x32xf32> to vector<2x32xf32>
    %c0_102 = arith.constant 0 : index
    %c0_103 = arith.constant 0 : index
    %176 = vector.load %arg11[%c0_102, %c0_103] : memref<2x64xf32, #tpu.memory_space<vmem>>, vector<2x64xf32>
    %cst_104 = arith.constant dense<0.000000e+00> : vector<2x32xf32>
    %177 = tpu.matmul %176, %29, %cst_104 {dimension_numbers = #tpu.dot_dimension_numbers<[1], [0], [0], [1], [0, 0, 1, 1], [], []>} : vector<2x64xf32>, vector<64x32xf32>, vector<2x32xf32> -> vector<2x32xf32>
    %178 = arith.addf %175, %177 : vector<2x32xf32>
    %179 = math.tanh %178 : vector<2x32xf32>
    %180 = arith.subf %179, %150 : vector<2x32xf32>
    %181 = arith.mulf %28, %180 : vector<2x32xf32>
    %182 = arith.addf %181, %150 : vector<2x32xf32>
    %c0_105 = arith.constant 0 : index
    %c0_106 = arith.constant 0 : index
    %183 = vector.load %arg11[%c0_105, %c0_106] : memref<2x64xf32, #tpu.memory_space<vmem>>, vector<2x32xf32>
    tpu.vector_store %arg11[%c0_105, %c0_106], %182 {strides = array<i32>} : memref<2x64xf32, #tpu.memory_space<vmem>>, vector<2x32xf32>,
    %184 = arith.index_cast %169 : i32 to index
    %c0_107 = arith.constant 0 : index
    %c0_108 = arith.constant 0 : index
    %185 = vector.load %arg12[%184, %c0_107, %c0_108] : memref<5x2x32xf32, #tpu.memory_space<vmem>>, vector<1x2x32xf32>
    %186 = vector.shape_cast %185 : vector<1x2x32xf32> to vector<2x32xf32>
    %187 = vector.shape_cast %182 : vector<2x32xf32> to vector<1x2x32xf32>
    tpu.vector_store %arg12[%184, %c0_107, %c0_108], %187 {strides = array<i32>} : memref<5x2x32xf32, #tpu.memory_space<vmem>>, vector<1x2x32xf32>,
    %c4 = arith.constant 4 : index
    %c0_109 = arith.constant 0 : index
    %c0_110 = arith.constant 0 : index
    %188 = vector.load %arg10[%c4, %c0_109, %c0_110] : memref<8x2x32xf32, #tpu.memory_space<vmem>>, vector<1x2x32xf32>
    %189 = vector.shape_cast %188 : vector<1x2x32xf32> to vector<2x32xf32>
    %190 = vector.shape_cast %182 : vector<2x32xf32> to vector<1x2x32xf32>
    tpu.vector_store %arg10[%c4, %c0_109, %c0_110], %190 {strides = array<i32>} : memref<8x2x32xf32, #tpu.memory_space<vmem>>, vector<1x2x32xf32>,
    %c5_i32_111 = arith.constant 5 : i32
    %191 = arith.addi %3, %c5_i32_111 : i32
    %c5_i32_112 = arith.constant 5 : i32
    %c0_i32_113 = arith.constant 0 : i32
    %192 = arith.cmpi eq, %c5_i32_112, %c0_i32_113 : i32
    %c1_i32_114 = arith.constant 1 : i32
    %193 = arith.select %192, %c1_i32_114, %c5_i32_112 : i32
    %194 = arith.remsi %191, %193 : i32
    %c0_i32_115 = arith.constant 0 : i32
    %195 = arith.cmpi ne, %194, %c0_i32_115 : i32
    %c0_i32_116 = arith.constant 0 : i32
    %196 = arith.cmpi slt, %194, %c0_i32_116 : i32
    %c0_i32_117 = arith.constant 0 : i32
    %197 = arith.cmpi slt, %193, %c0_i32_117 : i32
    %198 = arith.xori %196, %197 : i1
    %199 = arith.andi %198, %195 : i1
    %200 = arith.addi %194, %193 : i32
    %201 = arith.select %199, %200, %194 : i32
    %202 = arith.index_cast %201 : i32 to index
    %c0_118 = arith.constant 0 : index
    %c0_119 = arith.constant 0 : index
    %203 = vector.load %arg12[%202, %c0_118, %c0_119] : memref<5x2x32xf32, #tpu.memory_space<vmem>>, vector<1x2x32xf32>
    %204 = vector.shape_cast %203 : vector<1x2x32xf32> to vector<2x32xf32>
    %c0_120 = arith.constant 0 : index
    %c32_121 = arith.constant 32 : index
    %205 = vector.load %arg11[%c0_120, %c32_121] : memref<2x64xf32, #tpu.memory_space<vmem>>, vector<2x32xf32>
    tpu.vector_store %arg11[%c0_120, %c32_121], %204 {strides = array<i32>} : memref<2x64xf32, #tpu.memory_space<vmem>>, vector<2x32xf32>,
    %206 = vector.extract_strided_slice %25 {offsets = [5, 0, 0], sizes = [1, 2, 32], strides = [1, 1, 1]} : vector<8x2x32xf32> to vector<1x2x32xf32>
    %207 = vector.shape_cast %206 : vector<1x2x32xf32> to vector<2x32xf32>
    %c0_122 = arith.constant 0 : index
    %c0_123 = arith.constant 0 : index
    %208 = vector.load %arg11[%c0_122, %c0_123] : memref<2x64xf32, #tpu.memory_space<vmem>>, vector<2x64xf32>
    %cst_124 = arith.constant dense<0.000000e+00> : vector<2x32xf32>
    %209 = tpu.matmul %208, %29, %cst_124 {dimension_numbers = #tpu.dot_dimension_numbers<[1], [0], [0], [1], [0, 0, 1, 1], [], []>} : vector<2x64xf32>, vector<64x32xf32>, vector<2x32xf32> -> vector<2x32xf32>
    %210 = arith.addf %207, %209 : vector<2x32xf32>
    %211 = math.tanh %210 : vector<2x32xf32>
    %212 = arith.subf %211, %182 : vector<2x32xf32>
    %213 = arith.mulf %28, %212 : vector<2x32xf32>
    %214 = arith.addf %213, %182 : vector<2x32xf32>
    %c0_125 = arith.constant 0 : index
    %c0_126 = arith.constant 0 : index
    %215 = vector.load %arg11[%c0_125, %c0_126] : memref<2x64xf32, #tpu.memory_space<vmem>>, vector<2x32xf32>
    tpu.vector_store %arg11[%c0_125, %c0_126], %214 {strides = array<i32>} : memref<2x64xf32, #tpu.memory_space<vmem>>, vector<2x32xf32>,
    %216 = arith.index_cast %201 : i32 to index
    %c0_127 = arith.constant 0 : index
    %c0_128 = arith.constant 0 : index
    %217 = vector.load %arg12[%216, %c0_127, %c0_128] : memref<5x2x32xf32, #tpu.memory_space<vmem>>, vector<1x2x32xf32>
    %218 = vector.shape_cast %217 : vector<1x2x32xf32> to vector<2x32xf32>
    %219 = vector.shape_cast %214 : vector<2x32xf32> to vector<1x2x32xf32>
    tpu.vector_store %arg12[%216, %c0_127, %c0_128], %219 {strides = array<i32>} : memref<5x2x32xf32, #tpu.memory_space<vmem>>, vector<1x2x32xf32>,
    %c5 = arith.constant 5 : index
    %c0_129 = arith.constant 0 : index
    %c0_130 = arith.constant 0 : index
    %220 = vector.load %arg10[%c5, %c0_129, %c0_130] : memref<8x2x32xf32, #tpu.memory_space<vmem>>, vector<1x2x32xf32>
    %221 = vector.shape_cast %220 : vector<1x2x32xf32> to vector<2x32xf32>
    %222 = vector.shape_cast %214 : vector<2x32xf32> to vector<1x2x32xf32>
    tpu.vector_store %arg10[%c5, %c0_129, %c0_130], %222 {strides = array<i32>} : memref<8x2x32xf32, #tpu.memory_space<vmem>>, vector<1x2x32xf32>,
    %c6_i32 = arith.constant 6 : i32
    %223 = arith.addi %3, %c6_i32 : i32
    %c5_i32_131 = arith.constant 5 : i32
    %c0_i32_132 = arith.constant 0 : i32
    %224 = arith.cmpi eq, %c5_i32_131, %c0_i32_132 : i32
    %c1_i32_133 = arith.constant 1 : i32
    %225 = arith.select %224, %c1_i32_133, %c5_i32_131 : i32
    %226 = arith.remsi %223, %225 : i32
    %c0_i32_134 = arith.constant 0 : i32
    %227 = arith.cmpi ne, %226, %c0_i32_134 : i32
    %c0_i32_135 = arith.constant 0 : i32
    %228 = arith.cmpi slt, %226, %c0_i32_135 : i32
    %c0_i32_136 = arith.constant 0 : i32
    %229 = arith.cmpi slt, %225, %c0_i32_136 : i32
    %230 = arith.xori %228, %229 : i1
    %231 = arith.andi %230, %227 : i1
    %232 = arith.addi %226, %225 : i32
    %233 = arith.select %231, %232, %226 : i32
    %234 = arith.index_cast %233 : i32 to index
    %c0_137 = arith.constant 0 : index
    %c0_138 = arith.constant 0 : index
    %235 = vector.load %arg12[%234, %c0_137, %c0_138] : memref<5x2x32xf32, #tpu.memory_space<vmem>>, vector<1x2x32xf32>
    %236 = vector.shape_cast %235 : vector<1x2x32xf32> to vector<2x32xf32>
    %c0_139 = arith.constant 0 : index
    %c32_140 = arith.constant 32 : index
    %237 = vector.load %arg11[%c0_139, %c32_140] : memref<2x64xf32, #tpu.memory_space<vmem>>, vector<2x32xf32>
    tpu.vector_store %arg11[%c0_139, %c32_140], %236 {strides = array<i32>} : memref<2x64xf32, #tpu.memory_space<vmem>>, vector<2x32xf32>,
    %238 = vector.extract_strided_slice %25 {offsets = [6, 0, 0], sizes = [1, 2, 32], strides = [1, 1, 1]} : vector<8x2x32xf32> to vector<1x2x32xf32>
    %239 = vector.shape_cast %238 : vector<1x2x32xf32> to vector<2x32xf32>
    %c0_141 = arith.constant 0 : index
    %c0_142 = arith.constant 0 : index
    %240 = vector.load %arg11[%c0_141, %c0_142] : memref<2x64xf32, #tpu.memory_space<vmem>>, vector<2x64xf32>
    %cst_143 = arith.constant dense<0.000000e+00> : vector<2x32xf32>
    %241 = tpu.matmul %240, %29, %cst_143 {dimension_numbers = #tpu.dot_dimension_numbers<[1], [0], [0], [1], [0, 0, 1, 1], [], []>} : vector<2x64xf32>, vector<64x32xf32>, vector<2x32xf32> -> vector<2x32xf32>
    %242 = arith.addf %239, %241 : vector<2x32xf32>
    %243 = math.tanh %242 : vector<2x32xf32>
    %244 = arith.subf %243, %214 : vector<2x32xf32>
    %245 = arith.mulf %28, %244 : vector<2x32xf32>
    %246 = arith.addf %245, %214 : vector<2x32xf32>
    %c0_144 = arith.constant 0 : index
    %c0_145 = arith.constant 0 : index
    %247 = vector.load %arg11[%c0_144, %c0_145] : memref<2x64xf32, #tpu.memory_space<vmem>>, vector<2x32xf32>
    tpu.vector_store %arg11[%c0_144, %c0_145], %246 {strides = array<i32>} : memref<2x64xf32, #tpu.memory_space<vmem>>, vector<2x32xf32>,
    %248 = arith.index_cast %233 : i32 to index
    %c0_146 = arith.constant 0 : index
    %c0_147 = arith.constant 0 : index
    %249 = vector.load %arg12[%248, %c0_146, %c0_147] : memref<5x2x32xf32, #tpu.memory_space<vmem>>, vector<1x2x32xf32>
    %250 = vector.shape_cast %249 : vector<1x2x32xf32> to vector<2x32xf32>
    %251 = vector.shape_cast %246 : vector<2x32xf32> to vector<1x2x32xf32>
    tpu.vector_store %arg12[%248, %c0_146, %c0_147], %251 {strides = array<i32>} : memref<5x2x32xf32, #tpu.memory_space<vmem>>, vector<1x2x32xf32>,
    %c6 = arith.constant 6 : index
    %c0_148 = arith.constant 0 : index
    %c0_149 = arith.constant 0 : index
    %252 = vector.load %arg10[%c6, %c0_148, %c0_149] : memref<8x2x32xf32, #tpu.memory_space<vmem>>, vector<1x2x32xf32>
    %253 = vector.shape_cast %252 : vector<1x2x32xf32> to vector<2x32xf32>
    %254 = vector.shape_cast %246 : vector<2x32xf32> to vector<1x2x32xf32>
    tpu.vector_store %arg10[%c6, %c0_148, %c0_149], %254 {strides = array<i32>} : memref<8x2x32xf32, #tpu.memory_space<vmem>>, vector<1x2x32xf32>,
    %c7_i32 = arith.constant 7 : i32
    %255 = arith.addi %3, %c7_i32 : i32
    %c5_i32_150 = arith.constant 5 : i32
    %c0_i32_151 = arith.constant 0 : i32
    %256 = arith.cmpi eq, %c5_i32_150, %c0_i32_151 : i32
    %c1_i32_152 = arith.constant 1 : i32
    %257 = arith.select %256, %c1_i32_152, %c5_i32_150 : i32
    %258 = arith.remsi %255, %257 : i32
    %c0_i32_153 = arith.constant 0 : i32
    %259 = arith.cmpi ne, %258, %c0_i32_153 : i32
    %c0_i32_154 = arith.constant 0 : i32
    %260 = arith.cmpi slt, %258, %c0_i32_154 : i32
    %c0_i32_155 = arith.constant 0 : i32
    %261 = arith.cmpi slt, %257, %c0_i32_155 : i32
    %262 = arith.xori %260, %261 : i1
    %263 = arith.andi %262, %259 : i1
    %264 = arith.addi %258, %257 : i32
    %265 = arith.select %263, %264, %258 : i32
    %266 = arith.index_cast %265 : i32 to index
    %c0_156 = arith.constant 0 : index
    %c0_157 = arith.constant 0 : index
    %267 = vector.load %arg12[%266, %c0_156, %c0_157] : memref<5x2x32xf32, #tpu.memory_space<vmem>>, vector<1x2x32xf32>
    %268 = vector.shape_cast %267 : vector<1x2x32xf32> to vector<2x32xf32>
    %c0_158 = arith.constant 0 : index
    %c32_159 = arith.constant 32 : index
    %269 = vector.load %arg11[%c0_158, %c32_159] : memref<2x64xf32, #tpu.memory_space<vmem>>, vector<2x32xf32>
    tpu.vector_store %arg11[%c0_158, %c32_159], %268 {strides = array<i32>} : memref<2x64xf32, #tpu.memory_space<vmem>>, vector<2x32xf32>,
    %270 = vector.extract_strided_slice %25 {offsets = [7, 0, 0], sizes = [1, 2, 32], strides = [1, 1, 1]} : vector<8x2x32xf32> to vector<1x2x32xf32>
    %271 = vector.shape_cast %270 : vector<1x2x32xf32> to vector<2x32xf32>
    %c0_160 = arith.constant 0 : index
    %c0_161 = arith.constant 0 : index
    %272 = vector.load %arg11[%c0_160, %c0_161] : memref<2x64xf32, #tpu.memory_space<vmem>>, vector<2x64xf32>
    %cst_162 = arith.constant dense<0.000000e+00> : vector<2x32xf32>
    %273 = tpu.matmul %272, %29, %cst_162 {dimension_numbers = #tpu.dot_dimension_numbers<[1], [0], [0], [1], [0, 0, 1, 1], [], []>} : vector<2x64xf32>, vector<64x32xf32>, vector<2x32xf32> -> vector<2x32xf32>
    %274 = arith.addf %271, %273 : vector<2x32xf32>
    %275 = math.tanh %274 : vector<2x32xf32>
    %276 = arith.subf %275, %246 : vector<2x32xf32>
    %277 = arith.mulf %28, %276 : vector<2x32xf32>
    %278 = arith.addf %277, %246 : vector<2x32xf32>
    %c0_163 = arith.constant 0 : index
    %c0_164 = arith.constant 0 : index
    %279 = vector.load %arg11[%c0_163, %c0_164] : memref<2x64xf32, #tpu.memory_space<vmem>>, vector<2x32xf32>
    tpu.vector_store %arg11[%c0_163, %c0_164], %278 {strides = array<i32>} : memref<2x64xf32, #tpu.memory_space<vmem>>, vector<2x32xf32>,
    %280 = arith.index_cast %265 : i32 to index
    %c0_165 = arith.constant 0 : index
    %c0_166 = arith.constant 0 : index
    %281 = vector.load %arg12[%280, %c0_165, %c0_166] : memref<5x2x32xf32, #tpu.memory_space<vmem>>, vector<1x2x32xf32>
    %282 = vector.shape_cast %281 : vector<1x2x32xf32> to vector<2x32xf32>
    %283 = vector.shape_cast %278 : vector<2x32xf32> to vector<1x2x32xf32>
    tpu.vector_store %arg12[%280, %c0_165, %c0_166], %283 {strides = array<i32>} : memref<5x2x32xf32, #tpu.memory_space<vmem>>, vector<1x2x32xf32>,
    %c7 = arith.constant 7 : index
    %c0_167 = arith.constant 0 : index
    %c0_168 = arith.constant 0 : index
    %284 = vector.load %arg10[%c7, %c0_167, %c0_168] : memref<8x2x32xf32, #tpu.memory_space<vmem>>, vector<1x2x32xf32>
    %285 = vector.shape_cast %284 : vector<1x2x32xf32> to vector<2x32xf32>
    %286 = vector.shape_cast %278 : vector<2x32xf32> to vector<1x2x32xf32>
    tpu.vector_store %arg10[%c7, %c0_167, %c0_168], %286 {strides = array<i32>} : memref<8x2x32xf32, #tpu.memory_space<vmem>>, vector<1x2x32xf32>,
    %c0_169 = arith.constant 0 : index
    %c0_170 = arith.constant 0 : index
    %c0_171 = arith.constant 0 : index
    %287 = vector.load %arg10[%c0_169, %c0_170, %c0_171] : memref<8x2x32xf32, #tpu.memory_space<vmem>>, vector<8x2x32xf32>
    %288 = vector.shape_cast %287 : vector<8x2x32xf32> to vector<16x32xf32>
    %c0_172 = arith.constant 0 : index
    %c0_173 = arith.constant 0 : index
    %289 = vector.load %arg6[%c0_172, %c0_173] : memref<32x8xf32, #tpu.memory_space<vmem>>, vector<32x8xf32>
    %cst_174 = arith.constant dense<0.000000e+00> : vector<16x8xf32>
    %290 = tpu.matmul %288, %289, %cst_174 {dimension_numbers = #tpu.dot_dimension_numbers<[1], [0], [0], [1], [0, 0, 1, 1], [], []>} : vector<16x32xf32>, vector<32x8xf32>, vector<16x8xf32> -> vector<16x8xf32>
    %c0_175 = arith.constant 0 : index
    %c0_176 = arith.constant 0 : index
    %291 = vector.load %arg7[%c0_175, %c0_176] : memref<1x8xf32, #tpu.memory_space<vmem>>, vector<1x8xf32>
    %292 = vector.broadcast %291 : vector<1x8xf32> to vector<16x8xf32>
    %293 = arith.addf %290, %292 : vector<16x8xf32>
    %294 = vector.shape_cast %293 : vector<16x8xf32> to vector<8x2x8xf32>
    %c0_177 = arith.constant 0 : index
    %c0_178 = arith.constant 0 : index
    %c0_179 = arith.constant 0 : index
    %295 = vector.load %arg9[%c0_177, %c0_178, %c0_179] : memref<8x2x8xf32, #tpu.memory_space<vmem>>, vector<8x2x8xf32>
    tpu.vector_store %arg9[%c0_177, %c0_178, %c0_179], %294 {strides = array<i32>} : memref<8x2x8xf32, #tpu.memory_space<vmem>>, vector<8x2x8xf32>,
    return
  }
  func.func @transform_0(%arg0: i32) -> (i32, i32, i32) {
    %c0_i32 = arith.constant 0 : i32
    %c0_i32_0 = arith.constant 0 : i32
    %c0_i32_1 = arith.constant 0 : i32
    return %arg0, %c0_i32, %c0_i32_0 : i32, i32, i32
  }
  func.func @transform_1(%arg0: i32) -> (i32, i32) {
    %c0_i32 = arith.constant 0 : i32
    %c0_i32_0 = arith.constant 0 : i32
    %c0_i32_1 = arith.constant 0 : i32
    return %c0_i32, %c0_i32_0 : i32, i32
  }
  func.func @transform_2(%arg0: i32) -> (i32, i32) {
    %c0_i32 = arith.constant 0 : i32
    %c0_i32_0 = arith.constant 0 : i32
    %c0_i32_1 = arith.constant 0 : i32
    return %c0_i32, %c0_i32_0 : i32, i32
  }
  func.func @transform_3(%arg0: i32) -> (i32, i32) {
    %c0_i32 = arith.constant 0 : i32
    %c0_i32_0 = arith.constant 0 : i32
    %c0_i32_1 = arith.constant 0 : i32
    return %c0_i32, %c0_i32_0 : i32, i32
  }
  func.func @transform_4(%arg0: i32) -> (i32, i32) {
    %c0_i32 = arith.constant 0 : i32
    %c0_i32_0 = arith.constant 0 : i32
    %c0_i32_1 = arith.constant 0 : i32
    return %c0_i32, %c0_i32_0 : i32, i32
  }
  func.func @transform_5(%arg0: i32) -> (i32, i32) {
    %c0_i32 = arith.constant 0 : i32
    %c0_i32_0 = arith.constant 0 : i32
    %c0_i32_1 = arith.constant 0 : i32
    return %c0_i32, %c0_i32_0 : i32, i32
  }
  func.func @transform_6(%arg0: i32) -> (i32, i32) {
    %c0_i32 = arith.constant 0 : i32
    %c0_i32_0 = arith.constant 0 : i32
    %c0_i32_1 = arith.constant 0 : i32
    return %c0_i32, %c0_i32_0 : i32, i32
  }
  func.func @transform_7(%arg0: i32) -> (i32, i32) {
    %c0_i32 = arith.constant 0 : i32
    %c0_i32_0 = arith.constant 0 : i32
    %c0_i32_1 = arith.constant 0 : i32
    return %c0_i32, %c0_i32_0 : i32, i32
  }
  func.func @transform_8(%arg0: i32) -> (i32, i32, i32) {
    %c0_i32 = arith.constant 0 : i32
    %c0_i32_0 = arith.constant 0 : i32
    %c0_i32_1 = arith.constant 0 : i32
    return %arg0, %c0_i32, %c0_i32_0 : i32, i32, i32
  }
  func.func @transform_9(%arg0: i32) -> (i32, i32, i32) {
    %c0_i32 = arith.constant 0 : i32
    %c0_i32_0 = arith.constant 0 : i32
    %c0_i32_1 = arith.constant 0 : i32
    return %arg0, %c0_i32, %c0_i32_0 : i32, i32, i32
  }
}

</mosaic_0001>

<bundles_post_ra>
// kernel: tpu_custom_call.1
= control target key start
LH: loop header
LB: loop body
LE: loop exit
PB: predicated region body
PF: predicated region fallthrough
CT: control target
= control target key end

     0   :  { %15 = vsyncpa [#allocation5], 0  ;;  %vm39_vm0 = vcmask 254976   ;;  %vm109_vm1 = vcmask 1043456   ;;  %v75_v2 = vlaneseq  ;;  %v1772_v3 = vmov 0.0   ;;  %s2204_s0 = inlined_call_operand.vmem [shape: f32[8,2,4], index: 0, kind: input, shape index: {}]   ;;  %s2205_s1 = inlined_call_operand.vmem [shape: f32[4,32], index: 1, kind: input, shape index: {}]   ;;  %s2206_s2 = inlined_call_operand.vmem [shape: f32[1,32], index: 2, kind: input, shape index: {}]   ;;  %s2207_s3 = inlined_call_operand.vmem [shape: f32[1,32], index: 3, kind: input, shape index: {}]   ;;  %s2208_s4 = inlined_call_operand.vmem [shape: f32[64,32], index: 4, kind: input, shape index: {}]   ;;  %s2209_s5 = inlined_call_operand.vmem [shape: f32[32,8], index: 5, kind: input, shape index: {}]   ;;  %s2210_s6 = inlined_call_operand.vmem [shape: f32[1,8], index: 6, kind: input, shape index: {}]   ;;  %s2211_s7 = inlined_call_operand.vmem [shape: f32[1,32], index: 7, kind: input, shape index: {}]   ;;  %s2212_s8 = inlined_call_operand.hbm [shape: f32[8,2,8], index: 8, kind: output, shape index: {0}]   ;;  %s2213_s9 = inlined_call_operand.hbm [shape: f32[8,2,32], index: 9, kind: output, shape index: {1}]  }
   0x1   :  { %v1832_v0 = vld [vmem:[%s2208_s4 + $0x38] sm:$0xff]  ;;  %v1837_v1 = vld [vmem:[%s2208_s4 + $0x30] sm:$0xff]  ;;  %40 = vst.msk [vmem:[#allocation3] sm:$0x3] %vm39_vm0, %v1772_v3  ;;  %41 = vst.msk [vmem:[#allocation3 + $0x2] sm:$0x3] %vm39_vm0, %v1772_v3  ;;  %1542 = vmatprep.subr.mxu1 %v1772_v3 }
   0x2   :  { %42 = vst.msk [vmem:[#allocation3 + $0x4] sm:$0x3] %vm39_vm0, %v1772_v3  ;;  %43 = vst.msk [vmem:[#allocation3 + $0x6] sm:$0x3] %vm39_vm0, %v1772_v3  ;;  %v54_v4 = vld [vmem:[%s2205_s1] sm:$0xf]  ;;  %1543 = vmatpush3.msra.mxu1 %v1832_v0 }
   0x3   :  { %44 = vst.msk [vmem:[#allocation3 + $0x8] sm:$0x3] %vm39_vm0, %v1772_v3  ;;  %v46_v5 = vld [vmem:[%s2204_s0] sm:$0x3]  ;;  %v47_v6 = vld [vmem:[%s2204_s0 + $0x2] sm:$0x3]  ;;  %1537 = vmatprep.subr.msk.mxu0 %vm109_vm1, %v54_v4  ;;  %1544 = vmatprep.subr.mxu1 %v1772_v3 }
   0x4   :  { %v48_v7 = vld [vmem:[%s2204_s0 + $0x4] sm:$0x3]  ;;  %v49_v8 = vld [vmem:[%s2204_s0 + $0x6] sm:$0x3]  ;;  %1538 = vmatpush3.msk.msra.mxu0 %vm109_vm1, %v54_v4  ;;  %v1773_v9 = vmov 1983009808   ;;  %1545 = vmatpush3.msra.mxu1 %v1837_v1  ;;  %v70_v14 = vcombine.low %v46_v5, %v47_v6 }
   0x5   :  { %v73_v10 = vunpack.c.l.s4 %v1773_v9  ;;  %v1869_v11 = vshrl.u32 %v75_v2, 7  ;;  %v1874_v12 = vld [vmem:[%s2208_s4 + $0x28] sm:$0xff]  ;;  %1561 = vmatprep.subr.mxu0 %v1772_v3  ;;  %1546 = vmatprep.subr.mxu1 %v1772_v3  ;;  %v71_v18 = vcombine.low %v48_v7, %v49_v8  ;;  %v1894_v22 = vld [vmem:[%s2208_s4 + $0x20] sm:$0xff]  ;;  %vm37_vm2 = vcmask 517120  }
   0x6   :  { %v50_v13 = vld [vmem:[%s2204_s0 + $0x8] sm:$0x3]  ;;  %v51_v15 = vld [vmem:[%s2204_s0 + $0xa] sm:$0x3]  ;;  %v52_v16 = vld [vmem:[%s2204_s0 + $0xc] sm:$0x3]  ;;  %1547 = vmatpush3.msra.mxu1 %v1874_v12 }
   0x7   :  { %v53_v17 = vld [vmem:[%s2204_s0 + $0xe] sm:$0x3]  ;;  %v74_v19 = vunpack.c.0.s8 %v73_v10  ;;  %v87_v20 = vcombine.low %v50_v13, %v51_v15 }
   0x8   :  { %v88_v21 = vcombine.low %v52_v16, %v53_v17 }
   0x9   :  { %16 = vsyncpa [#allocation7], 0  ;;  %v1898_v23 = vsub.s32 %v74_v19, %v1869_v11  ;;  %1548 = vmatprep.subr.mxu1 %v1772_v3  ;;  %38 = vst.msk [vmem:[#allocation2] sm:$0x3] %vm37_vm2, %v1772_v3  ;;  %vm1774_vm3 = vmmov 0   ;;  %v1908_v25 = vld [vmem:[%s2208_s4 + $0x18] sm:$0xff] }
   0xa   :  { %1558 = vmatprep.mubr.msk.f32.mxu1 %vm1774_vm3, %v1772_v3  ;;  %v360_v24 = vld [vmem:[#allocation3] sm:$0x3]  ;;  %1549 = vmatpush3.msra.mxu1 %v1894_v22  ;;  %s1775_s14 = smov 32   ;;  %vm104_vm4 = vcmask 31744   ;;  %v1919_v30 = vld [vmem:[%s2208_s4 + $0x10] sm:$0xff]  ;;  %v1926_v33 = vld [vmem:[%s2208_s4 + $0x8] sm:$0xff] }
   0xb   :  { %362 = vrot.lane.b32.xlu0 %v360_v24, %s1775_s14  ;;  %v78_v26 = vrot.slane %v70_v14, %v1898_v23  ;;  %v85_v27 = vrot.slane %v71_v18, %v1898_v23  ;;  %v95_v28 = vrot.slane %v87_v20, %v1898_v23  ;;  %v102_v29 = vrot.slane %v88_v21, %v1898_v23  ;;  %v1434_v34 = vld [vmem:[#allocation3 + $0x2] sm:$0x3]  ;;  %v264_v39 = vld [vmem:[%s2207_s3] sm:$0x1]  ;;  %v1437_v2 = vld [vmem:[#allocation3 + $0x4] sm:$0x3] }
   0xc   :  { %1550 = vmatprep.subr.mxu1 %v1772_v3  ;;  %v1933_v35 = vld [vmem:[%s2208_s4] sm:$0xff]  ;;  %vm365_vm5 = vcmask 517376   ;;  %vm368_vm6 = vcmask 523264   ;;  %v265_v40 = vmul.f32 0.0, %v264_v39  ;;  %v283_v41 = vsub.s32 0, %v1869_v11  ;;  %574 = vrot.lane.b32.xlu1 %v1437_v2, %s1775_s14 }
   0xd   :  { %v86_v31 = vcombine.low %v78_v26, %v85_v27  ;;  %v103_v32 = vcombine.low %v95_v28, %v102_v29  ;;  %1551 = vmatpush3.msra.mxu1 %v1908_v25  ;;  %v1428_v42 = vld [vmem:[%s2206_s2] ss:$0 sm:$0xff]  ;;  %v1440_v4 = vld [vmem:[#allocation3 + $0x6] sm:$0x3]  ;;  %v1443_v18 = vld [vmem:[#allocation3 + $0x8] sm:$0x3] }
   0xe   :  { %1552 = vmatprep.subr.mxu1 %v1772_v3  ;;  %v284_v45 = vrot.slane %v265_v40, %v283_v41  ;;  %v1988_v50 = vrot.slane %v264_v39, %v283_v41  ;;  %v2011_v10 = vld [vmem:[%s2211_s7] ss:$0 sm:$0xff]  ;;  %vm1247_vm7 = vcmask 261120  }
   0xf   :  { %1539 = vmatprep.mubr.msk.f32.mxu0 %vm104_vm4, %v86_v31  ;;  %1553 = vmatpush3.msra.mxu1 %v1919_v30 }
  0x10   :  { %1540 = vmatmul.mubr.msk.f32.vlgmr.msra.gmra.mxu0 %vm104_vm4, %v103_v32  ;;  %1554 = vmatprep.subr.mxu1 %v1772_v3  ;;  %v344_v36 = vld [vmem:[#allocation2] sm:$0x3] }
  0x11   :  { %1555 = vmatpush3.msra.mxu1 %v1926_v33  ;;  %469 = vrot.lane.b32.xlu0 %v1434_v34, %s1775_s14 }
  0x12   :  { %1556 = vmatprep.subr.mxu1 %v1772_v3  ;;  %1562 = vmatpush3.msra.mxu0 %v1832_v0 }
  0x13   :  { %1557 = vmatpush3.msra.mxu1 %v1933_v35  ;;  %1563 = vmatprep.subr.mxu0 %v1772_v3 }
  0x14   :  { %1564 = vmatpush3.msra.mxu0 %v1837_v1  ;;  %1577 = vmatprep.mubr.msk.f32.mxu0 %vm1774_vm3, %v1772_v3 }
  0x15   :  { %1565 = vmatprep.subr.mxu0 %v1772_v3  ;;  %1580 = vmatprep.subr.mxu1 %v1772_v3 }
  0x16   :  { %1566 = vmatpush3.msra.mxu0 %v1874_v12  ;;  %679 = vrot.lane.b32.xlu1 %v1440_v4, %s1775_s14 }
  0x17   :  { %1567 = vmatprep.subr.mxu0 %v1772_v3  ;;  %784 = vrot.lane.b32.xlu0 %v1443_v18, %s1775_s14 }
  0x18   :  { %1568 = vmatpush3.msra.mxu0 %v1894_v22 }
  0x19   :  { %1569 = vmatprep.subr.mxu0 %v1772_v3 }
  0x1a   :  { %1570 = vmatpush3.msra.mxu0 %v1908_v25 }
  0x1b   :  { %1571 = vmatprep.subr.mxu0 %v1772_v3 }
  0x1c   :  { %1572 = vmatpush3.msra.mxu0 %v1919_v30 }
  0x1d   :  { %1573 = vmatprep.subr.mxu0 %v1772_v3 }
  0x1e   :  { %1574 = vmatpush3.msra.mxu0 %v1926_v33 }
  0x1f   :  { %1575 = vmatprep.subr.mxu0 %v1772_v3 }
  0x20   :  { %1576 = vmatpush3.msra.mxu0 %v1933_v35 }
  0x21   :  { %1599 = vmatprep.subr.mxu0 %v1772_v3 }
  0x7d   :  { %v363_v37 = vpop.permute.xlu0 %362 }
  0x7e   :  { %366 = vst.msk [vmem:[#allocation2] sm:$0x3] %vm365_vm5, %v363_v37  ;;  %v575_v29 = vpop.permute.xlu1 %574 }
  0x83   :  { %v470_v15 = vpop.permute.xlu0 %469 }
  0x85   :  { %v367_v38 = vld [vmem:[#allocation2] sm:$0x3] }
  0x86   :  { %1559 = vmatmul.mubr.msk.f32.vlgmr.msra.gmra.mxu1 %vm368_vm6, %v367_v38 }
  0x87   :  { %1581 = vmatpush3.msra.mxu1 %v1832_v0  ;;  %1596 = vmatprep.mubr.msk.f32.mxu1 %vm1774_vm3, %v1772_v3 }
  0x88   :  { %1582 = vmatprep.subr.mxu1 %v1772_v3 }
  0x89   :  { %1583 = vmatpush3.msra.mxu1 %v1837_v1 }
  0x8a   :  { %1584 = vmatprep.subr.mxu1 %v1772_v3 }
  0x8b   :  { %1585 = vmatpush3.msra.mxu1 %v1874_v12 }
  0x8c   :  { %1586 = vmatprep.subr.mxu1 %v1772_v3 }
  0x8d   :  { %1587 = vmatpush3.msra.mxu1 %v1894_v22 }
  0x8e   :  { %1588 = vmatprep.subr.mxu1 %v1772_v3 }
  0x8f   :  { %1589 = vmatpush3.msra.mxu1 %v1908_v25 }
  0x90   :  { %1590 = vmatprep.subr.mxu1 %v1772_v3 }
  0x91   :  { %1591 = vmatpush3.msra.mxu1 %v1919_v30 }
  0x92   :  { %1592 = vmatprep.subr.mxu1 %v1772_v3 }
  0x93   :  { %1593 = vmatpush3.msra.mxu1 %v1926_v33 }
  0x94   :  { %1594 = vmatprep.subr.mxu1 %v1772_v3 }
  0x95   :  { %1595 = vmatpush3.msra.mxu1 %v1933_v35 }
  0x96   :  { %1618 = vmatprep.subr.mxu1 %v1772_v3 }
  0xd0   :  { %v1541_v43 = vpop.f32.mrf.mxu0 }
  0xd1   :  { %v185_v44 = vadd.f32 %v1541_v43, %v1428_v42 }
  0xd2   :  { %v179_v46 = vpop.f32.mrf.mxu0 }
  0xd3   :  { %v207_v47 = vcombine.high %v185_v44, %v185_v44  ;;  %v1986_v48 = vrot.slane %v185_v44, %v1898_v23  ;;  %v180_v49 = vadd.f32 %v1428_v42, %v179_v46  ;;  %v680_v42 = vpop.permute.xlu1 %679 }
  0xd5   :  { %v190_v51 = vcombine.high %v180_v49, %v180_v49  ;;  %v197_v52 = vrot.slane %v180_v49, %v1898_v23  ;;  %v1992_v53 = vadd.f32 %v284_v45, %v1986_v48  ;;  %v221_v54 = vrot.slane %v207_v47, %v1898_v23 }
  0xd7   :  { %v205_v55 = vcombine.high %v197_v52, %v197_v52  ;;  %v204_v56 = vrot.slane %v190_v51, %v1898_v23  ;;  %v1997_v57 = vadd.f32 %v1988_v50, %v221_v54  ;;  %v223_v58 = vcombine.high %v221_v54, %v221_v54 }
  0xd8   :  { %v321_v5 = vadd.f32 %v284_v45, %v197_v52 }
  0xd9   :  { %v322_v59 = vadd.f32 %v284_v45, %v205_v55  ;;  %v1999_v60 = vadd.f32 %v284_v45, %v204_v56  ;;  %v206_v61 = vcombine.high %v204_v56, %v204_v56  ;;  %v2002_v62 = vadd.f32 %v1988_v50, %v223_v58  ;;  %v785_v55 = vpop.permute.xlu0 %784 }
  0xdb   :  { %v2004_v63 = vadd.f32 %v284_v45, %v206_v61 }
 0x146   :  { %v438_v6 = vpop.f32.mrf.mxu1 }
 0x147   :  { %v442_v7 = vadd.f32 %v438_v6, %v321_v5 }
 0x148   :  { %v1560_v8 = vpop.f32.mrf.mxu1 }
 0x149   :  { %1712 = vtanh.f32 %v442_v7 }
 0x156   :  { %v1713_v9 = vpop.eup %1712 }
 0x157   :  { %v444_v11 = vsub.f32 %v1713_v9, %v344_v36 }
 0x159   :  { %v445_v13 = vmul.f32 %v2011_v10, %v444_v11 }
 0x15b   :  { %v446_v14 = vadd.f32 %v445_v13, %v344_v36 }
 0x15d   :  { %449 = vst.msk [vmem:[#allocation3] sm:$0x3] %vm39_vm0, %v446_v14  ;;  %450 = vst.msk [vmem:[#allocation6] sm:$0x3] %vm39_vm0, %v446_v14 }
 0x15e   :  { %448 = vst.msk [vmem:[#allocation2] sm:$0x3] %vm39_vm0, %v446_v14 }
 0x15f   :  { %472 = vst.msk [vmem:[#allocation2] sm:$0x3] %vm365_vm5, %v470_v15 }
 0x164   :  { %v887_v16 = vld [vmem:[#allocation3] sm:$0x3] }
 0x165   :  { %889 = vrot.lane.b32.xlu1 %v887_v16, %s1775_s14 }
 0x166   :  { %v473_v17 = vld [vmem:[#allocation2] sm:$0x3] }
 0x167   :  { %1578 = vmatmul.mubr.msk.f32.vlgmr.msra.gmra.mxu0 %vm368_vm6, %v473_v17 }
 0x168   :  { %1600 = vmatpush3.msra.mxu0 %v1832_v0  ;;  %1615 = vmatprep.mubr.msk.f32.mxu0 %vm1774_vm3, %v1772_v3 }
 0x169   :  { %1601 = vmatprep.subr.mxu0 %v1772_v3 }
 0x16a   :  { %1602 = vmatpush3.msra.mxu0 %v1837_v1 }
 0x16b   :  { %1603 = vmatprep.subr.mxu0 %v1772_v3 }
 0x16c   :  { %1604 = vmatpush3.msra.mxu0 %v1874_v12 }
 0x16d   :  { %1605 = vmatprep.subr.mxu0 %v1772_v3 }
 0x16e   :  { %1606 = vmatpush3.msra.mxu0 %v1894_v22 }
 0x16f   :  { %1607 = vmatprep.subr.mxu0 %v1772_v3 }
 0x170   :  { %1608 = vmatpush3.msra.mxu0 %v1908_v25 }
 0x171   :  { %1609 = vmatprep.subr.mxu0 %v1772_v3 }
 0x172   :  { %1610 = vmatpush3.msra.mxu0 %v1919_v30 }
 0x173   :  { %1611 = vmatprep.subr.mxu0 %v1772_v3 }
 0x174   :  { %1612 = vmatpush3.msra.mxu0 %v1926_v33 }
 0x175   :  { %1613 = vmatprep.subr.mxu0 %v1772_v3 }
 0x176   :  { %1614 = vmatpush3.msra.mxu0 %v1933_v35 }
 0x177   :  { %1637 = vmatprep.subr.mxu0 %v1772_v3 }
 0x1d7   :  { %v890_v5 = vpop.permute.xlu1 %889 }
 0x227   :  { %v543_v19 = vpop.f32.mrf.mxu0 }
 0x228   :  { %v547_v20 = vadd.f32 %v543_v19, %v322_v59 }
 0x229   :  { %v1579_v21 = vpop.f32.mrf.mxu0 }
 0x22a   :  { %1714 = vtanh.f32 %v547_v20 }
 0x237   :  { %v1715_v24 = vpop.eup %1714 }
 0x238   :  { %v549_v26 = vsub.f32 %v1715_v24, %v446_v14 }
 0x23a   :  { %v550_v27 = vmul.f32 %v2011_v10, %v549_v26 }
 0x23c   :  { %v551_v28 = vadd.f32 %v550_v27, %v446_v14 }
 0x23e   :  { %552 = vst.msk [vmem:[#allocation2] sm:$0x3] %vm39_vm0, %v551_v28  ;;  %1436 = vst.msk [vmem:[#allocation3 + $0x2] sm:$0x3] %vm39_vm0, %v551_v28 }
 0x23f   :  { %555 = vst.msk [vmem:[#allocation6 + $0x2] sm:$0x3] %vm39_vm0, %v551_v28 }
 0x240   :  { %577 = vst.msk [vmem:[#allocation2] sm:$0x3] %vm365_vm5, %v575_v29  ;;  %v1196_v29 = vld [vmem:[%s2209_s5 + $0x10] sm:$0xff] }
 0x245   :  { %v1447_v31 = vld [vmem:[#allocation3 + $0x2] sm:$0x3] }
 0x246   :  { %994 = vrot.lane.b32.xlu0 %v1447_v31, %s1775_s14  ;;  %v1195_v31 = vld [vmem:[%s2209_s5 + $0x8] sm:$0xff] }
 0x247   :  { %v578_v32 = vld [vmem:[#allocation2] sm:$0x3] }
 0x248   :  { %1597 = vmatmul.mubr.msk.f32.vlgmr.msra.gmra.mxu1 %vm368_vm6, %v578_v32  ;;  %v1194_v32 = vld [vmem:[%s2209_s5] sm:$0xff] }
 0x249   :  { %1619 = vmatpush3.msra.mxu1 %v1832_v0  ;;  %1634 = vmatprep.mubr.msk.f32.mxu1 %vm1774_vm3, %v1772_v3 }
 0x24a   :  { %1620 = vmatprep.subr.mxu1 %v1772_v3 }
 0x24b   :  { %1621 = vmatpush3.msra.mxu1 %v1837_v1 }
 0x24c   :  { %1622 = vmatprep.subr.mxu1 %v1772_v3 }
 0x24d   :  { %1623 = vmatpush3.msra.mxu1 %v1874_v12 }
 0x24e   :  { %1624 = vmatprep.subr.mxu1 %v1772_v3 }
 0x24f   :  { %1625 = vmatpush3.msra.mxu1 %v1894_v22 }
 0x250   :  { %1626 = vmatprep.subr.mxu1 %v1772_v3 }
 0x251   :  { %1627 = vmatpush3.msra.mxu1 %v1908_v25 }
 0x252   :  { %1628 = vmatprep.subr.mxu1 %v1772_v3 }
 0x253   :  { %1629 = vmatpush3.msra.mxu1 %v1919_v30 }
 0x254   :  { %1630 = vmatprep.subr.mxu1 %v1772_v3 }
 0x255   :  { %1631 = vmatpush3.msra.mxu1 %v1926_v33 }
 0x256   :  { %1632 = vmatprep.subr.mxu1 %v1772_v3 }
 0x257   :  { %1633 = vmatpush3.msra.mxu1 %v1933_v35 }
 0x258   :  { %1656 = vmatprep.subr.mxu1 %v1772_v3 }
 0x308   :  { %v648_v34 = vpop.f32.mrf.mxu1 }
 0x309   :  { %v652_v36 = vadd.f32 %v648_v34, %v1999_v60 }
 0x30a   :  { %v1598_v37 = vpop.f32.mrf.mxu1 }
 0x30b   :  { %1716 = vtanh.f32 %v652_v36 }
 0x318   :  { %v1717_v38 = vpop.eup %1716 }
 0x319   :  { %v654_v39 = vsub.f32 %v1717_v38, %v551_v28 }
 0x31b   :  { %v655_v40 = vmul.f32 %v2011_v10, %v654_v39 }
 0x31d   :  { %v656_v41 = vadd.f32 %v655_v40, %v551_v28 }
 0x31f   :  { %657 = vst.msk [vmem:[#allocation2] sm:$0x3] %vm39_vm0, %v656_v41  ;;  %1439 = vst.msk [vmem:[#allocation3 + $0x4] sm:$0x3] %vm39_vm0, %v656_v41 }
 0x320   :  { %660 = vst.msk [vmem:[#allocation6 + $0x4] sm:$0x3] %vm39_vm0, %v656_v41 }
 0x321   :  { %682 = vst.msk [vmem:[#allocation2] sm:$0x3] %vm365_vm5, %v680_v42 }
 0x326   :  { %v1450_v43 = vld [vmem:[#allocation3 + $0x4] sm:$0x3] }
 0x327   :  { %1099 = vrot.lane.b32.xlu1 %v1450_v43, %s1775_s14  ;;  %v1188_v11 = vld [vmem:[#allocation6 + $0x4] sm:$0x3] }
 0x328   :  { %v683_v44 = vld [vmem:[#allocation2] sm:$0x3] }
 0x329   :  { %1616 = vmatmul.mubr.msk.f32.vlgmr.msra.gmra.mxu0 %vm368_vm6, %v683_v44 }
 0x32a   :  { %1638 = vmatpush3.msra.mxu0 %v1832_v0  ;;  %1653 = vmatprep.mubr.msk.f32.mxu0 %vm1774_vm3, %v1772_v3 }
 0x32b   :  { %1639 = vmatprep.subr.mxu0 %v1772_v3 }
 0x32c   :  { %1640 = vmatpush3.msra.mxu0 %v1837_v1 }
 0x32d   :  { %1641 = vmatprep.subr.mxu0 %v1772_v3 }
 0x32e   :  { %1642 = vmatpush3.msra.mxu0 %v1874_v12 }
 0x32f   :  { %1643 = vmatprep.subr.mxu0 %v1772_v3 }
 0x330   :  { %1644 = vmatpush3.msra.mxu0 %v1894_v22 }
 0x331   :  { %1645 = vmatprep.subr.mxu0 %v1772_v3 }
 0x332   :  { %1646 = vmatpush3.msra.mxu0 %v1908_v25 }
 0x333   :  { %1647 = vmatprep.subr.mxu0 %v1772_v3 }
 0x334   :  { %1648 = vmatpush3.msra.mxu0 %v1919_v30 }
 0x335   :  { %1649 = vmatprep.subr.mxu0 %v1772_v3 }
 0x336   :  { %1650 = vmatpush3.msra.mxu0 %v1926_v33 }
 0x337   :  { %1651 = vmatprep.subr.mxu0 %v1772_v3 }
 0x338   :  { %1652 = vmatpush3.msra.mxu0 %v1933_v35 }
 0x339   :  { %1675 = vmatprep.subr.mxu0 %v1772_v3 }
 0x399   :  { %v1100_v27 = vpop.permute.xlu1 %1099 }
 0x3e9   :  { %v753_v45 = vpop.f32.mrf.mxu0 }
 0x3ea   :  { %v757_v46 = vadd.f32 %v753_v45, %v2004_v63 }
 0x3eb   :  { %v1617_v47 = vpop.f32.mrf.mxu0 }
 0x3ec   :  { %1718 = vtanh.f32 %v757_v46 }
 0x3f9   :  { %v1719_v49 = vpop.eup %1718 }
 0x3fa   :  { %v759_v51 = vsub.f32 %v1719_v49, %v656_v41 }
 0x3fc   :  { %v760_v52 = vmul.f32 %v2011_v10, %v759_v51 }
 0x3fe   :  { %v761_v54 = vadd.f32 %v760_v52, %v656_v41 }
 0x400   :  { %762 = vst.msk [vmem:[#allocation2] sm:$0x3] %vm39_vm0, %v761_v54  ;;  %1442 = vst.msk [vmem:[#allocation3 + $0x6] sm:$0x3] %vm39_vm0, %v761_v54 }
 0x401   :  { %765 = vst.msk [vmem:[#allocation6 + $0x6] sm:$0x3] %vm39_vm0, %v761_v54 }
 0x402   :  { %787 = vst.msk [vmem:[#allocation2] sm:$0x3] %vm365_vm5, %v785_v55 }
 0x408   :  { %v1189_v8 = vld [vmem:[#allocation6 + $0x6] sm:$0x3] }
 0x409   :  { %v788_v56 = vld [vmem:[#allocation2] sm:$0x3] }
 0x40a   :  { %1635 = vmatmul.mubr.msk.f32.vlgmr.msra.gmra.mxu1 %vm368_vm6, %v788_v56 }
 0x40b   :  { %1657 = vmatpush3.msra.mxu1 %v1832_v0  ;;  %1672 = vmatprep.mubr.msk.f32.mxu1 %vm1774_vm3, %v1772_v3 }
 0x40c   :  { %1658 = vmatprep.subr.mxu1 %v1772_v3 }
 0x40d   :  { %1659 = vmatpush3.msra.mxu1 %v1837_v1 }
 0x40e   :  { %1660 = vmatprep.subr.mxu1 %v1772_v3 }
 0x40f   :  { %1661 = vmatpush3.msra.mxu1 %v1874_v12 }
 0x410   :  { %1662 = vmatprep.subr.mxu1 %v1772_v3 }
 0x411   :  { %1663 = vmatpush3.msra.mxu1 %v1894_v22 }
 0x412   :  { %1664 = vmatprep.subr.mxu1 %v1772_v3 }
 0x413   :  { %1665 = vmatpush3.msra.mxu1 %v1908_v25 }
 0x414   :  { %1666 = vmatprep.subr.mxu1 %v1772_v3 }
 0x415   :  { %1667 = vmatpush3.msra.mxu1 %v1919_v30 }
 0x416   :  { %1668 = vmatprep.subr.mxu1 %v1772_v3 }
 0x417   :  { %1669 = vmatpush3.msra.mxu1 %v1926_v33 }
 0x418   :  { %1670 = vmatprep.subr.mxu1 %v1772_v3 }
 0x419   :  { %1671 = vmatpush3.msra.mxu1 %v1933_v35 }
 0x4ca   :  { %v858_v58 = vpop.f32.mrf.mxu1 }
 0x4cb   :  { %v862_v59 = vadd.f32 %v858_v58, %v1992_v53 }
 0x4cc   :  { %v1636_v60 = vpop.f32.mrf.mxu1 }
 0x4cd   :  { %1720 = vtanh.f32 %v862_v59 }
 0x4da   :  { %v1721_v61 = vpop.eup %1720 }
 0x4db   :  { %v864_v63 = vsub.f32 %v1721_v61, %v761_v54 }
 0x4dd   :  { %v865_v2 = vmul.f32 %v2011_v10, %v864_v63 }
 0x4df   :  { %v866_v4 = vadd.f32 %v865_v2, %v761_v54 }
 0x4e1   :  { %867 = vst.msk [vmem:[#allocation2] sm:$0x3] %vm39_vm0, %v866_v4  ;;  %1445 = vst.msk [vmem:[#allocation3 + $0x8] sm:$0x3] %vm39_vm0, %v866_v4 }
 0x4e2   :  { %870 = vst.msk [vmem:[#allocation6 + $0x8] sm:$0x3] %vm39_vm0, %v866_v4 }
 0x4e3   :  { %892 = vst.msk [vmem:[#allocation2] sm:$0x3] %vm365_vm5, %v890_v5 }
 0x4e9   :  { %v1190_v43 = vld [vmem:[#allocation6 + $0x8] sm:$0x3] }
 0x4ea   :  { %v893_v6 = vld [vmem:[#allocation2] sm:$0x3] }
 0x4eb   :  { %1654 = vmatmul.mubr.msk.f32.vlgmr.msra.gmra.mxu0 %vm368_vm6, %v893_v6 }
 0x4ec   :  { %1676 = vmatpush3.msra.mxu0 %v1832_v0  ;;  %1691 = vmatprep.mubr.msk.f32.mxu0 %vm1774_vm3, %v1772_v3  ;;  %v222_v0 = vcombine.high %v1986_v48, %v1986_v48  ;;  %v1186_v48 = vld [vmem:[#allocation6] sm:$0x3] }
 0x4ed   :  { %1677 = vmatprep.subr.mxu0 %v1772_v3 }
 0x4ee   :  { %1678 = vmatpush3.msra.mxu0 %v1837_v1  ;;  %v326_v1 = vadd.f32 %v1988_v50, %v222_v0 }
 0x4ef   :  { %1679 = vmatprep.subr.mxu0 %v1772_v3 }
 0x4f0   :  { %1680 = vmatpush3.msra.mxu0 %v1874_v12 }
 0x4f1   :  { %1681 = vmatprep.subr.mxu0 %v1772_v3 }
 0x4f2   :  { %1682 = vmatpush3.msra.mxu0 %v1894_v22 }
 0x4f3   :  { %1683 = vmatprep.subr.mxu0 %v1772_v3 }
 0x4f4   :  { %1684 = vmatpush3.msra.mxu0 %v1908_v25 }
 0x4f5   :  { %1685 = vmatprep.subr.mxu0 %v1772_v3 }
 0x4f6   :  { %1686 = vmatpush3.msra.mxu0 %v1919_v30 }
 0x4f7   :  { %1687 = vmatprep.subr.mxu0 %v1772_v3 }
 0x4f8   :  { %1688 = vmatpush3.msra.mxu0 %v1926_v33  ;;  %v1187_v33 = vld [vmem:[#allocation6 + $0x2] sm:$0x3] }
 0x4f9   :  { %1689 = vmatprep.subr.mxu0 %v1772_v3  ;;  %v995_v3 = vpop.permute.xlu0 %994  ;;  %v1213_v50 = vcombine.low %v1186_v48, %v1187_v33 }
 0x4fa   :  { %1690 = vmatpush3.msra.mxu0 %v1933_v35  ;;  %v1214_v35 = vcombine.low %v1188_v11, %v1189_v8 }
 0x4fb   :  { %v1221_v14 = vrot.slane %v1213_v50, %v1898_v23 }
 0x4fc   :  { %v1228_v13 = vrot.slane %v1214_v35, %v1898_v23 }
 0x4fe   :  { %v1229_v16 = vcombine.low %v1221_v14, %v1228_v13 }
 0x5ab   :  { %v963_v12 = vpop.f32.mrf.mxu0 }
 0x5ac   :  { %v967_v22 = vadd.f32 %v963_v12, %v326_v1 }
 0x5ad   :  { %v1655_v25 = vpop.f32.mrf.mxu0 }
 0x5ae   :  { %1722 = vtanh.f32 %v967_v22 }
 0x5bb   :  { %v1723_v53 = vpop.eup %1722 }
 0x5bc   :  { %v969_v7 = vsub.f32 %v1723_v53, %v866_v4 }
 0x5be   :  { %v970_v30 = vmul.f32 %v2011_v10, %v969_v7 }
 0x5c0   :  { %v971_v9 = vadd.f32 %v970_v30, %v866_v4 }
 0x5c2   :  { %973 = vst.msk [vmem:[#allocation3] sm:$0x3] %vm39_vm0, %v971_v9  ;;  %975 = vst.msk [vmem:[#allocation6 + $0xa] sm:$0x3] %vm39_vm0, %v971_v9 }
 0x5c3   :  { %972 = vst.msk [vmem:[#allocation2] sm:$0x3] %vm39_vm0, %v971_v9 }
 0x5c4   :  { %997 = vst.msk [vmem:[#allocation2] sm:$0x3] %vm365_vm5, %v995_v3 }
 0x5c9   :  { %v1191_v42 = vld [vmem:[#allocation6 + $0xa] sm:$0x3] }
 0x5ca   :  { %v1230_v44 = vcombine.low %v1190_v43, %v1191_v42 }
 0x5cb   :  { %v998_v15 = vld [vmem:[#allocation2] sm:$0x3] }
 0x5cc   :  { %1673 = vmatmul.mubr.msk.f32.vlgmr.msra.gmra.mxu1 %vm368_vm6, %v998_v15 }
 0x5cd   :  { %1702 = vmatprep.mubr.msk.f32.mxu1 %vm1247_vm7, %v1229_v16 }
 0x68c   :  { %v1068_v17 = vpop.f32.mrf.mxu1 }
 0x68d   :  { %v1072_v18 = vadd.f32 %v1068_v17, %v1997_v57  ;;  %v1197_v57 = vld [vmem:[%s2209_s5 + $0x18] sm:$0xff]  ;;  %s1776_s5 = smov [#allocation6]  }
 0x68e   :  { %v1674_v19 = vpop.f32.mrf.mxu1  ;;  %1694 = vmatprep.subr.mxu1 %v1197_v57  ;;  %s1397_s30 = sshll.u32 %s1776_s5, 4  ;;  %s1398_s30 = int_to_ptr.vmem [resolvable:$true] %s1397_s30 }
 0x68f   :  { %1724 = vtanh.f32 %v1072_v18  ;;  %1695 = vmatpush3.msra.mxu1 %v1197_v57  ;;  %s1728_s10 = scalar_lea.vmem %s1398_s30, 256  ;;  %p1733_p1 = scmp.lt.s32.totalorder %s1398_s30, %s1398_s30 }
 0x690   :  { %1696 = vmatprep.subr.mxu1 %v1196_v29  ;;  %p1729_p0 = scmp.ne.s32.totalorder %s1398_s30, %s1728_s10  ;;  %p1734_p2 = scmp.lt.s32.totalorder %s1728_s10, %s1728_s10 }
 0x691   :  { %1697 = vmatpush3.msra.mxu1 %v1196_v29 }
 0x692   :  { %1698 = vmatprep.subr.mxu1 %v1195_v31  ;;  %p1735_p3 = por %p1734_p2, %p1733_p1 }
 0x693   :  { %1699 = vmatpush3.msra.mxu1 %v1195_v31 }
 0x694   :  { %1700 = vmatprep.subr.mxu1 %v1194_v32  ;;  %p1736_p4 = pnand %p1735_p3, %p1729_p0 }
 0x695   :  { %1701 = vmatpush3.msra.mxu1 %v1194_v32 }
 0x69c   :  { %v1725_v20 = vpop.eup %1724 }
 0x69d   :  { %v1074_v21 = vsub.f32 %v1725_v20, %v971_v9 }
 0x69f   :  { %v1075_v24 = vmul.f32 %v2011_v10, %v1074_v21 }
 0x6a1   :  { %v1076_v26 = vadd.f32 %v1075_v24, %v971_v9 }
 0x6a3   :  { %1449 = vst.msk [vmem:[#allocation3 + $0x2] sm:$0x3] %vm39_vm0, %v1076_v26  ;;  %1080 = vst.msk [vmem:[#allocation6 + $0xc] sm:$0x3] %vm39_vm0, %v1076_v26 }
 0x6a4   :  { %1077 = vst.msk [vmem:[#allocation2] sm:$0x3] %vm39_vm0, %v1076_v26 }
 0x6a5   :  { %1102 = vst.msk [vmem:[#allocation2] sm:$0x3] %vm365_vm5, %v1100_v27 }
 0x6aa   :  { %v1192_v45 = vld [vmem:[#allocation6 + $0xc] sm:$0x3] }
 0x6ac   :  { %v1103_v28 = vld [vmem:[#allocation2] sm:$0x3] }
 0x6ad   :  { %1692 = vmatmul.mubr.msk.f32.vlgmr.msra.gmra.mxu0 %vm368_vm6, %v1103_v28 }
 0x76d   :  { %v1173_v34 = vpop.f32.mrf.mxu0 }
 0x76e   :  { %v1177_v36 = vadd.f32 %v1173_v34, %v2002_v62  ;;  %v1238_v62 = vrot.slane %v1230_v44, %v1898_v23 }
 0x76f   :  { %v1693_v37 = vpop.f32.mrf.mxu0 }
 0x770   :  { %1726 = vtanh.f32 %v1177_v36 }
 0x77d   :  { %v1727_v38 = vpop.eup %1726 }
 0x77e   :  { %v1179_v39 = vsub.f32 %v1727_v38, %v1076_v26 }
 0x780   :  { %v1180_v40 = vmul.f32 %v2011_v10, %v1179_v39 }
 0x782   :  { %v1181_v41 = vadd.f32 %v1180_v40, %v1076_v26 }
 0x784   :  { %1182 = vst.msk [vmem:[#allocation2] sm:$0x3] %vm39_vm0, %v1181_v41  ;;  %1452 = vst.msk [vmem:[#allocation3 + $0x4] sm:$0x3] %vm39_vm0, %v1181_v41 }
 0x785   :  { %1185 = vst.msk [vmem:[#allocation6 + $0xe] sm:$0x3] %vm39_vm0, %v1181_v41 }
 0x78c   :  { %v1193_v46 = vld [vmem:[#allocation6 + $0xe] sm:$0x3] }
 0x78d   :  { %v1231_v47 = vcombine.low %v1192_v45, %v1193_v46 }
 0x78f   :  { %v1245_v49 = vrot.slane %v1231_v47, %v1898_v23 }
 0x791   :  { %v1246_v51 = vcombine.low %v1238_v62, %v1245_v49 }
 0x793   :  { %1703 = vmatmul.mubr.msk.f32.vlgmr.msra.gmra.mxu1 %vm1247_vm7, %v1246_v51 }
 0x794   :  { %1739 = shalt.err (!%p1736_p4)
}
 0x795   :  { %s1777_s11 = smov 2   ;;  %v1453_v10 = vld [vmem:[%s2210_s6] ss:$0 sm:$0xff]  ;;  %vm1371_vm8 = vcmask 58368  }
 0x796   :  { %1403 = dma.vmem_to_hbm [thread:$0]  %s1398_s30, 256, %s2213_s9, [#allocation7], %s1775_s14, %s1775_s14, %s1777_s11  }
 0x797   :  { %s1778_s9 = smov [#allocation4]  }
 0x798   :  { %s1385_s16 = sshll.u32 %s1778_s9, 4  ;;  %s1386_s16 = int_to_ptr.vmem [resolvable:$true] %s1385_s16 }
 0x799   :  { %s1748_s6 = scalar_lea.vmem %s1386_s16, 256  ;;  %p1753_p6 = scmp.lt.s32.totalorder %s1386_s16, %s1386_s16 }
 0x79a   :  { %p1749_p5 = scmp.ne.s32.totalorder %s1386_s16, %s1748_s6  ;;  %p1754_p7 = scmp.lt.s32.totalorder %s1748_s6, %s1748_s6 }
 0x79c   :  { %p1755_p8 = por %p1754_p7, %p1753_p6 }
 0x79e   :  { %p1756_p9 = pnand %p1755_p8, %p1749_p5 }
 0x853   :  { %v1704_v52 = vpop.f32.mrf.mxu1 }
 0x854   :  { %v1324_v54 = vadd.f32 %v1704_v52, %v1453_v10 }
 0x855   :  { %v1318_v55 = vpop.f32.mrf.mxu1 }
 0x856   :  { %v1346_v56 = vcombine.high %v1324_v54, %v1324_v54  ;;  %v1353_v58 = vrot.slane %v1324_v54, %v1898_v23  ;;  %v1319_v59 = vadd.f32 %v1453_v10, %v1318_v55 }
 0x858   :  { %v1360_v60 = vrot.slane %v1346_v56, %v1898_v23  ;;  %v1361_v61 = vcombine.high %v1353_v58, %v1353_v58  ;;  %1376 = vst.msk [vmem:[#allocation4 + $0x8] sm:$0x3] %vm1371_vm8, %v1353_v58  ;;  %v1329_v63 = vcombine.high %v1319_v59, %v1319_v59  ;;  %v1336_v2 = vrot.slane %v1319_v59, %v1898_v23 }
 0x85a   :  { %v1362_v4 = vcombine.high %v1360_v60, %v1360_v60  ;;  %1377 = vst.msk [vmem:[#allocation4 + $0xa] sm:$0x3] %vm1371_vm8, %v1361_v61  ;;  %1378 = vst.msk [vmem:[#allocation4 + $0xc] sm:$0x3] %vm1371_vm8, %v1360_v60  ;;  %v1343_v5 = vrot.slane %v1329_v63, %v1898_v23  ;;  %v1344_v6 = vcombine.high %v1336_v2, %v1336_v2 }
 0x85b   :  { %1372 = vst.msk [vmem:[#allocation4] sm:$0x3] %vm1371_vm8, %v1336_v2 }
 0x85c   :  { %1379 = vst.msk [vmem:[#allocation4 + $0xe] sm:$0x3] %vm1371_vm8, %v1362_v4  ;;  %v1345_v0 = vcombine.high %v1343_v5, %v1343_v5  ;;  %1373 = vst.msk [vmem:[#allocation4 + $0x2] sm:$0x3] %vm1371_vm8, %v1344_v6 }
 0x85d   :  { %1374 = vst.msk [vmem:[#allocation4 + $0x4] sm:$0x3] %vm1371_vm8, %v1343_v5 }
 0x85e   :  { %1375 = vst.msk [vmem:[#allocation4 + $0x6] sm:$0x3] %vm1371_vm8, %v1345_v0 }
 0x85f   :  { %1759 = shalt.err (!%p1756_p9)
}
 0x860   :  { %1391 = dma.vmem_to_hbm [thread:$0]  %s1386_s16, 256, %s2212_s8, [#allocation5], %s1775_s14, %s1775_s14, %s1777_s11  }
 0x861   :  { %1768 = dma.done.wait [#allocation5], 256  }
 0x862   :  { %1769 = vsyncadd [#allocation5], 4294967040 }
 0x863   :  { %1770 = dma.done.wait [#allocation7], 256  }
 0x864   :  { %1771 = vsyncadd [#allocation7], 4294967040 }
 0x865   :  { %1410 = vsyncpa [#allocation5], 1 }
 0x866   :  { %1411 = vsyncpa [#allocation7], 1 }

</bundles_post_ra>
